<compile_context>
chip_gen: v6e
topology: v6e:2x2x1
jax: 0.10.0
libtpu: 0.0.40
codegen_flags: <defaults>
</compile_context>

<pallas_src>
import functools

import jax
import jax.numpy as jnp
from jax.experimental import pallas as pl
from jax.experimental.pallas import tpu as pltpu

_BN_EPS = 1e-5
_LANE = 128


# --------------------------- hardware-derived budgets ---------------------------

def _tpu_vmem_capacity():
    try:
        info = pltpu.get_tpu_info()
        cap = getattr(info, "vmem_capacity_bytes", None)
        if cap:
            return int(cap)
    except Exception:
        pass
    return 64 * 1024 * 1024                      # conservative (v7x per-TC)


_VMEM_CAP = _tpu_vmem_capacity()
_BIG_VMEM = _VMEM_CAP >= 100 * 1024 * 1024       # v5e / v6e 128 MiB parts
_VMEM_LIMIT = (96 if _BIG_VMEM else 44) * 1024 * 1024
_RESIDENT_W_BYTES = (8 if _BIG_VMEM else 4) * 1024 * 1024


# ------------------------------- small helpers --------------------------------

def _round_up(n, m):
    return ((n + m - 1) // m) * m


def _pad_axis(a, axis, target):
    if a.shape[axis] == target:
        return a
    pad = [(0, 0)] * a.ndim
    pad[axis] = (0, target - a.shape[axis])
    return jnp.pad(a, pad)


def _choose_tm(M):
    # Largest row tile that divides M and leaves >=2 grid steps (megacore);
    # multiples of 16 only (bf16 packs 16 rows/vreg -> unmasked stores).
    cands = (512, 256, 128, 64, 32, 16) if _BIG_VMEM else (256, 128, 64, 32, 16)
    for t in cands:
        if M % t == 0 and M // t >= 2:
            return t
    if M % 16 == 0 and M <= 1024:
        return M
    return None


def _choose_rb(Ho, Wo):
    # Largest divisor of Ho with rb*Wo <= 512 output rows per band.
    best = 1
    for rb in range(1, Ho + 1):
        if Ho % rb == 0 and rb * Wo <= 512:
            best = rb
    return best


# ------------------------------- Pallas kernels --------------------------------

def _matmul_bias_kernel(x_ref, w_ref, b_ref, o_ref, *, relu):
    y = jnp.dot(x_ref[...], w_ref[...], preferred_element_type=jnp.float32)
    y = y + b_ref[...]
    if relu:
        y = jnp.maximum(y, 0.0)
    o_ref[...] = y.astype(o_ref.dtype)


def _matmul_bias_add_relu_kernel(x_ref, w_ref, b_ref, r_ref, o_ref):
    y = jnp.dot(x_ref[...], w_ref[...], preferred_element_type=jnp.float32)
    y = y + b_ref[...] + r_ref[...].astype(jnp.float32)
    o_ref[...] = jnp.maximum(y, 0.0).astype(o_ref.dtype)


def _dual_matmul_bias_relu_kernel(xa_ref, wa_ref, ba_ref,
                                  xb_ref, wb_ref, bb_ref, o_ref):
    ya = jnp.dot(xa_ref[...], wa_ref[...], preferred_element_type=jnp.float32)
    ya = ya + ba_ref[...]
    yb = jnp.dot(xb_ref[...], wb_ref[...], preferred_element_type=jnp.float32)
    yb = yb + bb_ref[...]
    o_ref[...] = jnp.maximum(ya + yb, 0.0).astype(o_ref.dtype)


def _conv3x3_kernel(ph_ref, w_ref, b_ref, o_ref, *, stride, rb, Wo):
    # One output-row band: accumulate 9 tap-matmuls into an (rb*Wo, tn) f32
    # accumulator, then bias + ReLU, bf16 store.  BN scale is pre-folded into w.
    C = ph_ref.shape[-1]
    tn = o_ref.shape[-1]
    r0 = pl.multiple_of(pl.program_id(2) * rb, rb)
    acc = jnp.zeros((rb * Wo, tn), jnp.float32)
    if stride == 1:
        # (rb+2) padded rows for this band; 3 dw-shifted slabs reused across dh.
        rows = ph_ref[0, 0, pl.ds(r0, rb + 2)]           # (rb+2, Wo+2, C)
        for dw in range(3):
            slab = rows[:, dw:dw + Wo, :]                # (rb+2, Wo, C)
            for dh in range(3):
                win = slab[dh:dh + rb].reshape(rb * Wo, C)
                acc = acc + jnp.dot(win, w_ref[dh * 3 + dw],
                                    preferred_element_type=jnp.float32)
    else:
        s = stride
        for dh in range(3):
            for dw in range(3):
                p = (dh % s) * s + (dw % s)
                a, b2 = dh // s, dw // s
                win = ph_ref[p, 0, pl.ds(r0 + a, rb), b2:b2 + Wo, :]
                acc = acc + jnp.dot(win.reshape(rb * Wo, C), w_ref[dh * 3 + dw],
                                    preferred_element_type=jnp.float32)
    y = jnp.maximum(acc + b_ref[...], 0.0)
    o_ref[...] = y[None].astype(o_ref.dtype)


# ----------------------------- tiled call wrappers ------------------------------

def _run_matmul(kernel_fn, args, kinds, out_dtype, *, flops, bytes_accessed):
    """Row-tiled matmul-style pallas_call.

    kinds: 'x' (M,K) row-tiled, 'w' (K,N) weight, 'b' (1,N) bias, 'r' (M,N) residual.
    Weights/biases are kept VMEM-resident when they fit the per-gen budget.
    """
    M = args[0].shape[0]
    N = next(a.shape[1] for a, k in zip(args, kinds) if k == "w")
    w_bytes = sum(int(a.size) * a.dtype.itemsize
                  for a, k in zip(args, kinds) if k == "w")

    tm = _choose_tm(M)
    pad_rows = 0
    if tm is None:                                   # ragged-M fallback (rare)
        Mp = _round_up(M, 256)
        pad_rows = Mp - M
        args = [_pad_axis(a, 0, Mp) if k in ("x", "r") else a
                for a, k in zip(args, kinds)]
        M = Mp
        tm = _choose_tm(M)

    if w_bytes <= _RESIDENT_W_BYTES:
        # 1-D grid over row tiles; weight/bias index maps are constant -> DMA once.
        grid = (M // tm,)
        sem = ("parallel",)

        def spec(a, k):
            if k == "x":
                return pl.BlockSpec((tm, a.shape[1]), lambda i: (i, 0))
            if k == "w":
                return pl.BlockSpec(a.shape, lambda i: (0, 0))
            if k == "b":
                return pl.BlockSpec((1, N), lambda i: (0, 0))
            return pl.BlockSpec((tm, N), lambda i: (i, 0))          # 'r'

        out_spec = pl.BlockSpec((tm, N), lambda i: (i, 0))
    else:
        # N OUTER, M inner: the (K, tn) weight block stays resident across the
        # inner row sweep instead of being re-fetched per row tile.
        tn = 256 if N % 256 == 0 else _LANE
        grid = (N // tn, M // tm)
        sem = ("parallel", "parallel")

        def spec(a, k):
            if k == "x":
                return pl.BlockSpec((tm, a.shape[1]), lambda j, i: (i, 0))
            if k == "w":
                return pl.BlockSpec((a.shape[0], tn), lambda j, i: (0, j))
            if k == "b":
                return pl.BlockSpec((1, tn), lambda j, i: (0, j))
            return pl.BlockSpec((tm, tn), lambda j, i: (i, j))      # 'r'

        out_spec = pl.BlockSpec((tm, tn), lambda j, i: (i, j))

    out = pl.pallas_call(
        kernel_fn,
        out_shape=jax.ShapeDtypeStruct((M, N), out_dtype),
        grid=grid,
        in_specs=[spec(a, k) for a, k in zip(args, kinds)],
        out_specs=out_spec,
        compiler_params=pltpu.CompilerParams(
            dimension_semantics=sem, vmem_limit_bytes=_VMEM_LIMIT),
        cost_estimate=pl.CostEstimate(flops=int(flops), transcendentals=0,
                                      bytes_accessed=int(bytes_accessed)),
    )(*args)
    return out[:M - pad_rows] if pad_rows else out


def matmul_bias(x2d, w, bias, *, relu, out_dtype):
    M, K = x2d.shape
    N = w.shape[1]
    return _run_matmul(
        functools.partial(_matmul_bias_kernel, relu=relu),
        [x2d, w, bias], ["x", "w", "b"], out_dtype,
        flops=2 * M * K * N,
        bytes_accessed=2 * M * K + 2 * K * N
        + M * N * jnp.dtype(out_dtype).itemsize + 4 * N)


def matmul_bias_add_relu(x2d, w, bias, res2d, *, out_dtype):
    M, K = x2d.shape
    N = w.shape[1]
    return _run_matmul(
        _matmul_bias_add_relu_kernel,
        [x2d, w, bias, res2d], ["x", "w", "b", "r"], out_dtype,
        flops=2 * M * K * N,
        bytes_accessed=2 * M * K + 2 * K * N + 2 * M * N
        + M * N * jnp.dtype(out_dtype).itemsize + 4 * N)


def dual_matmul_bias_relu(xa, wa, ba, xb, wb, bb, *, out_dtype):
    M, Ka = xa.shape
    Kb = xb.shape[1]
    N = wa.shape[1]
    return _run_matmul(
        _dual_matmul_bias_relu_kernel,
        [xa, wa, ba, xb, wb, bb], ["x", "w", "b", "x", "w", "b"], out_dtype,
        flops=2 * M * (Ka + Kb) * N,
        bytes_accessed=2 * M * (Ka + Kb) + 2 * (Ka + Kb) * N
        + M * N * jnp.dtype(out_dtype).itemsize + 8 * N)


def conv3x3_bias_relu(phases, w_taps, bias, *, stride, Ho, Wo, out_dtype):
    P, B, Hph, Wph, C = phases.shape
    N = w_taps.shape[-1]
    tn = N if 9 * C * N * 2 <= _RESIDENT_W_BYTES else (256 if N % 256 == 0 else _LANE)
    rb = _choose_rb(Ho, Wo)
    n_bands = Ho // rb

    kernel = functools.partial(_conv3x3_kernel, stride=stride, rb=rb, Wo=Wo)
    flops = 2 * B * Ho * Wo * 9 * C * N
    bytes_accessed = (P * B * Hph * Wph * C) * 2 + 9 * C * N * 2 \
        + B * Ho * Wo * N * jnp.dtype(out_dtype).itemsize + 4 * N

    out = pl.pallas_call(
        kernel,
        out_shape=jax.ShapeDtypeStruct((B * n_bands, rb * Wo, N), out_dtype),
        grid=(B, N // tn, n_bands),               # bands innermost: weights + the
        in_specs=[                                # per-batch phase block stay resident
            pl.BlockSpec((P, 1, Hph, Wph, C), lambda b, j, r: (0, b, 0, 0, 0)),
            pl.BlockSpec((9, C, tn), lambda b, j, r: (0, 0, j)),
            pl.BlockSpec((1, tn), lambda b, j, r: (0, j)),
        ],
        out_specs=pl.BlockSpec((1, rb * Wo, tn),
                               lambda b, j, r: (b * n_bands + r, 0, j)),
        compiler_params=pltpu.CompilerParams(
            dimension_semantics=("parallel", "parallel", "parallel"),
            vmem_limit_bytes=_VMEM_LIMIT),
        cost_estimate=pl.CostEstimate(flops=int(flops), transcendentals=0,
                                      bytes_accessed=int(bytes_accessed)),
    )(phases, w_taps, bias)
    return out.reshape(B, Ho * Wo, N)


# ------------------------------- JAX glue ---------------------------------------

def _fold_bn_raw(bn):
    gamma, beta, mean, var = bn
    scale = gamma * jax.lax.rsqrt(var + _BN_EPS)
    return scale, beta - mean * scale


def _prep_1x1(w, bn, kin_p, kout_p):
    # [Cout, Cin, 1, 1] + BN -> scale-folded bf16 [Cin_p, Cout_p], f32 bias [1, Cout_p]
    scale, bias = _fold_bn_raw(bn)
    cout, cin = w.shape[0], w.shape[1]
    m = w.reshape(cout, cin).T * scale[None, :]
    m = _pad_axis(_pad_axis(m, 0, kin_p), 1, kout_p).astype(jnp.bfloat16)
    b = _pad_axis(bias.astype(jnp.float32), 0, kout_p).reshape(1, kout_p)
    return m, b


def _prep_3x3(w, bn, kin_p, kout_p):
    # [Cout, Cin, 3, 3] + BN -> scale-folded bf16 [9, Cin_p, Cout_p] (tap-major),
    # f32 bias [1, Cout_p]
    scale, bias = _fold_bn_raw(bn)
    cout, cin = w.shape[0], w.shape[1]
    m = jnp.transpose(w, (2, 3, 1, 0)).reshape(9, cin, cout) * scale[None, None, :]
    m = _pad_axis(_pad_axis(m, 1, kin_p), 2, kout_p).astype(jnp.bfloat16)
    b = _pad_axis(bias.astype(jnp.float32), 0, kout_p).reshape(1, kout_p)
    return m, b


def make_phases(y_nhwc, stride):
    """Phase-decompose the pad-1 input so every 3x3 tap is a contiguous window."""
    B, H, W, C = y_nhwc.shape
    xp = jnp.pad(y_nhwc, ((0, 0), (1, 1), (1, 1), (0, 0)))
    Ho = (H - 1) // stride + 1
    Wo = (W - 1) // stride + 1
    if stride == 1:
        return xp[None], Ho, Wo                       # (1, B, H+2, W+2, C)
    s = stride
    Hp = _round_up(H + 2, s)
    Wp = _round_up(W + 2, s)
    xp = jnp.pad(xp, ((0, 0), (0, Hp - (H + 2)), (0, Wp - (W + 2)), (0, 0)))
    ph = xp.reshape(B, Hp // s, s, Wp // s, s, C)
    ph = jnp.transpose(ph, (2, 4, 0, 1, 3, 5)).reshape(s * s, B, Hp // s, Wp // s, C)
    return ph, Ho, Wo                                 # phase p = (i%s)*s + (j%s)


def bottleneck_forward(x_nchw, params, stride, group=1):
    """[B, Fin, H, W] -> [B, 2*Fout, Ho, Wo]  (NCHW in/out; NHWC + bf16 inside)."""
    assert group == 1  # TODO(synk): grouped 3x3 conv (cardinality > 1) not implemented.
    x = jnp.transpose(x_nchw, (0, 2, 3, 1))           # NHWC
    B, H, W, Fin = x.shape
    Fout = params["w1"].shape[0]
    Cexp = params["w3"].shape[0]
    Fin_p, Fout_p, Cexp_p = (_round_up(c, _LANE) for c in (Fin, Fout, Cexp))

    xb = _pad_axis(x, 3, Fin_p).astype(jnp.bfloat16)  # lane-dense channels, bf16

    # conv1x1 + folded-BN + ReLU
    w1, b1 = _prep_1x1(params["w1"], params["bn1"], Fin_p, Fout_p)
    y1 = matmul_bias(xb.reshape(B * H * W, Fin_p), w1, b1,
                     relu=True, out_dtype=jnp.bfloat16)
    y1 = y1.reshape(B, H, W, Fout_p)

    # conv3x3 (stride, pad=1) + folded-BN + ReLU — row-band tiled, no im2col
    phases, Ho, Wo = make_phases(y1, stride)
    w2, b2 = _prep_3x3(params["w2"], params["bn2"], Fout_p, Fout_p)
    y2 = conv3x3_bias_relu(phases, w2, b2, stride=stride, Ho=Ho, Wo=Wo,
                           out_dtype=jnp.bfloat16)
    y2 = y2.reshape(B * Ho * Wo, Fout_p)

    # conv1x1 expansion + folded-BN, fused with residual (+BN) add + ReLU (bf16 store)
    w3, b3 = _prep_1x1(params["w3"], params["bn3"], Fout_p, Cexp_p)
    if "wr" in params:
        xs = xb[:, ::stride, ::stride, :].reshape(B * Ho * Wo, Fin_p)
        wr, br = _prep_1x1(params["wr"], params["bnr"], Fin_p, Cexp_p)
        out2d = dual_matmul_bias_relu(y2, w3, b3, xs, wr, br,
                                      out_dtype=jnp.bfloat16)
    else:
        res = xb.reshape(B * H * W, Cexp_p)           # identity (Fin == 2*Fout, stride 1)
        out2d = matmul_bias_add_relu(y2, w3, b3, res, out_dtype=jnp.bfloat16)

    out = out2d.reshape(B, Ho, Wo, Cexp_p)
    # When chaining blocks, return `out` here (NHWC, lane-padded, bf16) and skip the
    # slice / NCHW transpose / f32 upcast below (they exist only for module parity).
    out = out[..., :Cexp].astype(jnp.float32)
    return jnp.transpose(out, (0, 3, 1, 2))           # back to NCHW


# --------------------------- deterministic params --------------------------------

def make_params(key, Fin, Fout, stride, expansion=2):
    ks = jax.random.split(key, 8)

    def conv_w(k, cout, cin, kh, kw):
        return 0.1 * jax.random.normal(k, (cout, cin, kh, kw), jnp.float32)

    def bn(k, c):
        k1, k2, k3, k4 = jax.random.split(k, 4)
        gamma = 1.0 + 0.1 * jax.random.normal(k1, (c,), jnp.float32)
        beta = 0.1 * jax.random.normal(k2, (c,), jnp.float32)
        mean = 0.1 * jax.random.normal(k3, (c,), jnp.float32)
        var = 1.0 + 0.1 * jnp.abs(jax.random.normal(k4, (c,), jnp.float32))
        return gamma, beta, mean, var

    params = {
        "w1": conv_w(ks[0], Fout, Fin, 1, 1), "bn1": bn(ks[1], Fout),
        "w2": conv_w(ks[2], Fout, Fout, 3, 3), "bn2": bn(ks[3], Fout),
        "w3": conv_w(ks[4], expansion * Fout, Fout, 1, 1),
        "bn3": bn(ks[5], expansion * Fout),
    }
    if Fin != expansion * Fout or stride != 1:
        params["wr"] = conv_w(ks[6], expansion * Fout, Fin, 1, 1)
        params["bnr"] = bn(ks[7], expansion * Fout)
    return params


# ------------------------------ pure-JAX reference --------------------------------

def ref_forward(x_nchw, params, stride):
    def conv(x, w, s, pad):
        return jax.lax.conv_general_dilated(
            x, w, (s, s), pad, dimension_numbers=("NCHW", "OIHW", "NCHW"))

    def bn_apply(x, bnp):
        sc, bi = _fold_bn_raw(bnp)
        return x * sc[None, :, None, None] + bi[None, :, None, None]

    y = jax.nn.relu(bn_apply(conv(x_nchw, params["w1"], 1, "VALID"), params["bn1"]))
    y = jax.nn.relu(bn_apply(conv(y, params["w2"], stride, [(1, 1), (1, 1)]),
                             params["bn2"]))
    y = bn_apply(conv(y, params["w3"], 1, "VALID"), params["bn3"])
    if "wr" in params:
        r = bn_apply(conv(x_nchw, params["wr"], stride, "VALID"), params["bnr"])
    else:
        r = x_nchw
    return jax.nn.relu(y + r)


# ---------------------------------- main -------------------------------------------

if __name__ == "__main__":
    fwd = jax.jit(bottleneck_forward, static_argnames=("stride",))
    key = jax.random.PRNGKey(0)
    kx, kp, kx2, kp2 = jax.random.split(key, 4)

    # Case 1: downsampling block (stride 2, projection residual).
    B, Fin, Fout, H, W, stride = 2, 4, 4, 16, 16, 2
    x = jax.random.normal(kx, (B, Fin, H, W), jnp.float32)
    params = make_params(kp, Fin, Fout, stride)
    out = jax.block_until_ready(fwd(x, params, stride=stride))
    ref = jax.block_until_ready(ref_forward(x, params, stride))
    assert out.shape == ref.shape == (B, 2 * Fout, H // stride, W // stride), out.shape
    assert jnp.allclose(out, ref, atol=2e-2, rtol=2e-2), float(
        jnp.max(jnp.abs(out - ref)))

    # Case 2: identity-residual block (stride 1, Fin == expansion * Fout).
    B2, Fin2, Fout2, stride2 = 2, 8, 4, 1
    x2 = jax.random.normal(kx2, (B2, Fin2, H, W), jnp.float32)
    params2 = make_params(kp2, Fin2, Fout2, stride2)
    out2 = jax.block_until_ready(fwd(x2, params2, stride=stride2))
    ref2 = jax.block_until_ready(ref_forward(x2, params2, stride2))
    assert out2.shape == ref2.shape == (B2, 2 * Fout2, H, W), out2.shape
    assert jnp.allclose(out2, ref2, atol=2e-2, rtol=2e-2), float(
        jnp.max(jnp.abs(out2 - ref2)))

    print("KERNEL_OK")
</pallas_src>

<mosaic_0001>
module attributes {stable_mosaic.version = 11 : i64} {
  func.func @_matmul_bias_kernel(%arg0: i32, %arg1: memref<256x128xbf16, #tpu.memory_space<vmem>>, %arg2: memref<128x128xbf16, #tpu.memory_space<vmem>>, %arg3: memref<1x128xf32, #tpu.memory_space<vmem>>, %arg4: memref<256x128xbf16, #tpu.memory_space<vmem>>) attributes {dimension_semantics = [#tpu.dimension_semantics<parallel>], iteration_bounds = array<i64: 2>, scalar_prefetch = 0 : i64, scratch_operands = 0 : i64, tpu.core_type = #tpu.core_type<tc>, window_params = [{transform_indices = @transform_0, window_bounds = array<i64: 256, 128>}, {pipeline_mode = #tpu.pipeline_mode<synchronous>, transform_indices = @transform_1, window_bounds = array<i64: 128, 128>}, {pipeline_mode = #tpu.pipeline_mode<synchronous>, transform_indices = @transform_2, window_bounds = array<i64: 1, 128>}, {transform_indices = @transform_3, window_bounds = array<i64: 256, 128>}]} {
    %c0 = arith.constant 0 : index
    %c0_0 = arith.constant 0 : index
    %0 = vector.load %arg1[%c0, %c0_0] : memref<256x128xbf16, #tpu.memory_space<vmem>>, vector<256x128xbf16>
    %c0_1 = arith.constant 0 : index
    %c0_2 = arith.constant 0 : index
    %1 = vector.load %arg2[%c0_1, %c0_2] : memref<128x128xbf16, #tpu.memory_space<vmem>>, vector<128x128xbf16>
    %cst = arith.constant dense<0.000000e+00> : vector<256x128xf32>
    %2 = tpu.matmul %0, %1, %cst {dimension_numbers = #tpu.dot_dimension_numbers<[1], [0], [0], [1], [0, 0, 1, 1], [], []>} : vector<256x128xbf16>, vector<128x128xbf16>, vector<256x128xf32> -> vector<256x128xf32>
    %c0_3 = arith.constant 0 : index
    %c0_4 = arith.constant 0 : index
    %3 = vector.load %arg3[%c0_3, %c0_4] : memref<1x128xf32, #tpu.memory_space<vmem>>, vector<1x128xf32>
    %4 = vector.broadcast %3 : vector<1x128xf32> to vector<256x128xf32>
    %5 = arith.addf %2, %4 : vector<256x128xf32>
    %cst_5 = arith.constant 0.000000e+00 : f32
    %6 = vector.broadcast %cst_5 : f32 to vector<256x128xf32>
    %7 = arith.maximumf %5, %6 : vector<256x128xf32>
    %8 = arith.truncf %7 : vector<256x128xf32> to vector<256x128xbf16>
    %c0_6 = arith.constant 0 : index
    %c0_7 = arith.constant 0 : index
    %9 = vector.load %arg4[%c0_6, %c0_7] : memref<256x128xbf16, #tpu.memory_space<vmem>>, vector<256x128xbf16>
    tpu.vector_store %arg4[%c0_6, %c0_7], %8 {strides = array<i32>} : memref<256x128xbf16, #tpu.memory_space<vmem>>, vector<256x128xbf16>,
    return
  }
  func.func @transform_0(%arg0: i32) -> (i32, i32) {
    %c0_i32 = arith.constant 0 : i32
    %c0_i32_0 = arith.constant 0 : i32
    return %arg0, %c0_i32 : i32, i32
  }
  func.func @transform_1(%arg0: i32) -> (i32, i32) {
    %c0_i32 = arith.constant 0 : i32
    %c0_i32_0 = arith.constant 0 : i32
    %c0_i32_1 = arith.constant 0 : i32
    return %c0_i32, %c0_i32_0 : i32, i32
  }
  func.func @transform_2(%arg0: i32) -> (i32, i32) {
    %c0_i32 = arith.constant 0 : i32
    %c0_i32_0 = arith.constant 0 : i32
    %c0_i32_1 = arith.constant 0 : i32
    return %c0_i32, %c0_i32_0 : i32, i32
  }
  func.func @transform_3(%arg0: i32) -> (i32, i32) {
    %c0_i32 = arith.constant 0 : i32
    %c0_i32_0 = arith.constant 0 : i32
    return %arg0, %c0_i32 : i32, i32
  }
}

module attributes {stable_mosaic.version = 11 : i64} {
  func.func @_conv3x3_kernel(%arg0: i32, %arg1: i32, %arg2: i32, %arg3: memref<4x1x9x9x128xbf16, #tpu.memory_space<vmem>>, %arg4: memref<9x128x128xbf16, #tpu.memory_space<vmem>>, %arg5: memref<1x128xf32, #tpu.memory_space<vmem>>, %arg6: memref<1x64x128xbf16, #tpu.memory_space<vmem>>) attributes {dimension_semantics = [#tpu.dimension_semantics<parallel>, #tpu.dimension_semantics<parallel>, #tpu.dimension_semantics<parallel>], iteration_bounds = array<i64: 2, 1, 1>, scalar_prefetch = 0 : i64, scratch_operands = 0 : i64, tpu.core_type = #tpu.core_type<tc>, window_params = [{transform_indices = @transform_0, window_bounds = array<i64: 4, 1, 9, 9, 128>}, {transform_indices = @transform_1, window_bounds = array<i64: 9, 128, 128>}, {transform_indices = @transform_2, window_bounds = array<i64: 1, 128>}, {transform_indices = @transform_3, window_bounds = array<i64: 1, 64, 128>}]} {
    %c8_i32 = arith.constant 8 : i32
    %0 = arith.muli %arg2, %c8_i32 : i32
    %1 = tpu.assume_multiple %0, 8 : i32
    %cst = arith.constant 0.000000e+00 : f32
    %2 = vector.broadcast %cst : f32 to vector<64x128xf32>
    %c0_i32 = arith.constant 0 : i32
    %3 = arith.addi %1, %c0_i32 : i32
    %c0 = arith.constant 0 : index
    %c0_0 = arith.constant 0 : index
    %4 = arith.index_cast %3 : i32 to index
    %c0_1 = arith.constant 0 : index
    %c0_2 = arith.constant 0 : index
    %5 = vector.load %arg3[%c0, %c0_0, %4, %c0_1, %c0_2] : memref<4x1x9x9x128xbf16, #tpu.memory_space<vmem>>, vector<1x1x8x8x128xbf16>
    %6 = vector.shape_cast %5 : vector<1x1x8x8x128xbf16> to vector<8x8x128xbf16>
    %7 = vector.shape_cast %6 : vector<8x8x128xbf16> to vector<64x128xbf16>
    %c0_3 = arith.constant 0 : index
    %c0_4 = arith.constant 0 : index
    %c0_5 = arith.constant 0 : index
    %8 = vector.load %arg4[%c0_3, %c0_4, %c0_5] : memref<9x128x128xbf16, #tpu.memory_space<vmem>>, vector<1x128x128xbf16>
    %9 = vector.shape_cast %8 : vector<1x128x128xbf16> to vector<128x128xbf16>
    %cst_6 = arith.constant dense<0.000000e+00> : vector<64x128xf32>
    %10 = tpu.matmul %7, %9, %cst_6 {dimension_numbers = #tpu.dot_dimension_numbers<[1], [0], [0], [1], [0, 0, 1, 1], [], []>} : vector<64x128xbf16>, vector<128x128xbf16>, vector<64x128xf32> -> vector<64x128xf32>
    %11 = arith.addf %2, %10 : vector<64x128xf32>
    %c0_i32_7 = arith.constant 0 : i32
    %12 = arith.addi %1, %c0_i32_7 : i32
    %c1 = arith.constant 1 : index
    %c0_8 = arith.constant 0 : index
    %13 = arith.index_cast %12 : i32 to index
    %c0_9 = arith.constant 0 : index
    %c0_10 = arith.constant 0 : index
    %14 = vector.load %arg3[%c1, %c0_8, %13, %c0_9, %c0_10] : memref<4x1x9x9x128xbf16, #tpu.memory_space<vmem>>, vector<1x1x8x8x128xbf16>
    %15 = vector.shape_cast %14 : vector<1x1x8x8x128xbf16> to vector<8x8x128xbf16>
    %16 = vector.shape_cast %15 : vector<8x8x128xbf16> to vector<64x128xbf16>
    %c1_11 = arith.constant 1 : index
    %c0_12 = arith.constant 0 : index
    %c0_13 = arith.constant 0 : index
    %17 = vector.load %arg4[%c1_11, %c0_12, %c0_13] : memref<9x128x128xbf16, #tpu.memory_space<vmem>>, vector<1x128x128xbf16>
    %18 = vector.shape_cast %17 : vector<1x128x128xbf16> to vector<128x128xbf16>
    %cst_14 = arith.constant dense<0.000000e+00> : vector<64x128xf32>
    %19 = tpu.matmul %16, %18, %cst_14 {dimension_numbers = #tpu.dot_dimension_numbers<[1], [0], [0], [1], [0, 0, 1, 1], [], []>} : vector<64x128xbf16>, vector<128x128xbf16>, vector<64x128xf32> -> vector<64x128xf32>
    %20 = arith.addf %11, %19 : vector<64x128xf32>
    %c0_i32_15 = arith.constant 0 : i32
    %21 = arith.addi %1, %c0_i32_15 : i32
    %c0_16 = arith.constant 0 : index
    %c0_17 = arith.constant 0 : index
    %22 = arith.index_cast %21 : i32 to index
    %c1_18 = arith.constant 1 : index
    %c0_19 = arith.constant 0 : index
    %23 = vector.load %arg3[%c0_16, %c0_17, %22, %c1_18, %c0_19] : memref<4x1x9x9x128xbf16, #tpu.memory_space<vmem>>, vector<1x1x8x8x128xbf16>
    %24 = vector.shape_cast %23 : vector<1x1x8x8x128xbf16> to vector<8x8x128xbf16>
    %25 = vector.shape_cast %24 : vector<8x8x128xbf16> to vector<64x128xbf16>
    %c2 = arith.constant 2 : index
    %c0_20 = arith.constant 0 : index
    %c0_21 = arith.constant 0 : index
    %26 = vector.load %arg4[%c2, %c0_20, %c0_21] : memref<9x128x128xbf16, #tpu.memory_space<vmem>>, vector<1x128x128xbf16>
    %27 = vector.shape_cast %26 : vector<1x128x128xbf16> to vector<128x128xbf16>
    %cst_22 = arith.constant dense<0.000000e+00> : vector<64x128xf32>
    %28 = tpu.matmul %25, %27, %cst_22 {dimension_numbers = #tpu.dot_dimension_numbers<[1], [0], [0], [1], [0, 0, 1, 1], [], []>} : vector<64x128xbf16>, vector<128x128xbf16>, vector<64x128xf32> -> vector<64x128xf32>
    %29 = arith.addf %20, %28 : vector<64x128xf32>
    %c0_i32_23 = arith.constant 0 : i32
    %30 = arith.addi %1, %c0_i32_23 : i32
    %c2_24 = arith.constant 2 : index
    %c0_25 = arith.constant 0 : index
    %31 = arith.index_cast %30 : i32 to index
    %c0_26 = arith.constant 0 : index
    %c0_27 = arith.constant 0 : index
    %32 = vector.load %arg3[%c2_24, %c0_25, %31, %c0_26, %c0_27] : memref<4x1x9x9x128xbf16, #tpu.memory_space<vmem>>, vector<1x1x8x8x128xbf16>
    %33 = vector.shape_cast %32 : vector<1x1x8x8x128xbf16> to vector<8x8x128xbf16>
    %34 = vector.shape_cast %33 : vector<8x8x128xbf16> to vector<64x128xbf16>
    %c3 = arith.constant 3 : index
    %c0_28 = arith.constant 0 : index
    %c0_29 = arith.constant 0 : index
    %35 = vector.load %arg4[%c3, %c0_28, %c0_29] : memref<9x128x128xbf16, #tpu.memory_space<vmem>>, vector<1x128x128xbf16>
    %36 = vector.shape_cast %35 : vector<1x128x128xbf16> to vector<128x128xbf16>
    %cst_30 = arith.constant dense<0.000000e+00> : vector<64x128xf32>
    %37 = tpu.matmul %34, %36, %cst_30 {dimension_numbers = #tpu.dot_dimension_numbers<[1], [0], [0], [1], [0, 0, 1, 1], [], []>} : vector<64x128xbf16>, vector<128x128xbf16>, vector<64x128xf32> -> vector<64x128xf32>
    %38 = arith.addf %29, %37 : vector<64x128xf32>
    %c0_i32_31 = arith.constant 0 : i32
    %39 = arith.addi %1, %c0_i32_31 : i32
    %c3_32 = arith.constant 3 : index
    %c0_33 = arith.constant 0 : index
    %40 = arith.index_cast %39 : i32 to index
    %c0_34 = arith.constant 0 : index
    %c0_35 = arith.constant 0 : index
    %41 = vector.load %arg3[%c3_32, %c0_33, %40, %c0_34, %c0_35] : memref<4x1x9x9x128xbf16, #tpu.memory_space<vmem>>, vector<1x1x8x8x128xbf16>
    %42 = vector.shape_cast %41 : vector<1x1x8x8x128xbf16> to vector<8x8x128xbf16>
    %43 = vector.shape_cast %42 : vector<8x8x128xbf16> to vector<64x128xbf16>
    %c4 = arith.constant 4 : index
    %c0_36 = arith.constant 0 : index
    %c0_37 = arith.constant 0 : index
    %44 = vector.load %arg4[%c4, %c0_36, %c0_37] : memref<9x128x128xbf16, #tpu.memory_space<vmem>>, vector<1x128x128xbf16>
    %45 = vector.shape_cast %44 : vector<1x128x128xbf16> to vector<128x128xbf16>
    %cst_38 = arith.constant dense<0.000000e+00> : vector<64x128xf32>
    %46 = tpu.matmul %43, %45, %cst_38 {dimension_numbers = #tpu.dot_dimension_numbers<[1], [0], [0], [1], [0, 0, 1, 1], [], []>} : vector<64x128xbf16>, vector<128x128xbf16>, vector<64x128xf32> -> vector<64x128xf32>
    %47 = arith.addf %38, %46 : vector<64x128xf32>
    %c0_i32_39 = arith.constant 0 : i32
    %48 = arith.addi %1, %c0_i32_39 : i32
    %c2_40 = arith.constant 2 : index
    %c0_41 = arith.constant 0 : index
    %49 = arith.index_cast %48 : i32 to index
    %c1_42 = arith.constant 1 : index
    %c0_43 = arith.constant 0 : index
    %50 = vector.load %arg3[%c2_40, %c0_41, %49, %c1_42, %c0_43] : memref<4x1x9x9x128xbf16, #tpu.memory_space<vmem>>, vector<1x1x8x8x128xbf16>
    %51 = vector.shape_cast %50 : vector<1x1x8x8x128xbf16> to vector<8x8x128xbf16>
    %52 = vector.shape_cast %51 : vector<8x8x128xbf16> to vector<64x128xbf16>
    %c5 = arith.constant 5 : index
    %c0_44 = arith.constant 0 : index
    %c0_45 = arith.constant 0 : index
    %53 = vector.load %arg4[%c5, %c0_44, %c0_45] : memref<9x128x128xbf16, #tpu.memory_space<vmem>>, vector<1x128x128xbf16>
    %54 = vector.shape_cast %53 : vector<1x128x128xbf16> to vector<128x128xbf16>
    %cst_46 = arith.constant dense<0.000000e+00> : vector<64x128xf32>
    %55 = tpu.matmul %52, %54, %cst_46 {dimension_numbers = #tpu.dot_dimension_numbers<[1], [0], [0], [1], [0, 0, 1, 1], [], []>} : vector<64x128xbf16>, vector<128x128xbf16>, vector<64x128xf32> -> vector<64x128xf32>
    %56 = arith.addf %47, %55 : vector<64x128xf32>
    %c1_i32 = arith.constant 1 : i32
    %57 = arith.addi %1, %c1_i32 : i32
    %c0_47 = arith.constant 0 : index
    %c0_48 = arith.constant 0 : index
    %58 = arith.index_cast %57 : i32 to index
    %c0_49 = arith.constant 0 : index
    %c0_50 = arith.constant 0 : index
    %59 = vector.load %arg3[%c0_47, %c0_48, %58, %c0_49, %c0_50] : memref<4x1x9x9x128xbf16, #tpu.memory_space<vmem>>, vector<1x1x8x8x128xbf16>
    %60 = vector.shape_cast %59 : vector<1x1x8x8x128xbf16> to vector<8x8x128xbf16>
    %61 = vector.shape_cast %60 : vector<8x8x128xbf16> to vector<64x128xbf16>
    %c6 = arith.constant 6 : index
    %c0_51 = arith.constant 0 : index
    %c0_52 = arith.constant 0 : index
    %62 = vector.load %arg4[%c6, %c0_51, %c0_52] : memref<9x128x128xbf16, #tpu.memory_space<vmem>>, vector<1x128x128xbf16>
    %63 = vector.shape_cast %62 : vector<1x128x128xbf16> to vector<128x128xbf16>
    %cst_53 = arith.constant dense<0.000000e+00> : vector<64x128xf32>
    %64 = tpu.matmul %61, %63, %cst_53 {dimension_numbers = #tpu.dot_dimension_numbers<[1], [0], [0], [1], [0, 0, 1, 1], [], []>} : vector<64x128xbf16>, vector<128x128xbf16>, vector<64x128xf32> -> vector<64x128xf32>
    %65 = arith.addf %56, %64 : vector<64x128xf32>
    %c1_i32_54 = arith.constant 1 : i32
    %66 = arith.addi %1, %c1_i32_54 : i32
    %c1_55 = arith.constant 1 : index
    %c0_56 = arith.constant 0 : index
    %67 = arith.index_cast %66 : i32 to index
    %c0_57 = arith.constant 0 : index
    %c0_58 = arith.constant 0 : index
    %68 = vector.load %arg3[%c1_55, %c0_56, %67, %c0_57, %c0_58] : memref<4x1x9x9x128xbf16, #tpu.memory_space<vmem>>, vector<1x1x8x8x128xbf16>
    %69 = vector.shape_cast %68 : vector<1x1x8x8x128xbf16> to vector<8x8x128xbf16>
    %70 = vector.shape_cast %69 : vector<8x8x128xbf16> to vector<64x128xbf16>
    %c7 = arith.constant 7 : index
    %c0_59 = arith.constant 0 : index
    %c0_60 = arith.constant 0 : index
    %71 = vector.load %arg4[%c7, %c0_59, %c0_60] : memref<9x128x128xbf16, #tpu.memory_space<vmem>>, vector<1x128x128xbf16>
    %72 = vector.shape_cast %71 : vector<1x128x128xbf16> to vector<128x128xbf16>
    %cst_61 = arith.constant dense<0.000000e+00> : vector<64x128xf32>
    %73 = tpu.matmul %70, %72, %cst_61 {dimension_numbers = #tpu.dot_dimension_numbers<[1], [0], [0], [1], [0, 0, 1, 1], [], []>} : vector<64x128xbf16>, vector<128x128xbf16>, vector<64x128xf32> -> vector<64x128xf32>
    %74 = arith.addf %65, %73 : vector<64x128xf32>
    %c1_i32_62 = arith.constant 1 : i32
    %75 = arith.addi %1, %c1_i32_62 : i32
    %c0_63 = arith.constant 0 : index
    %c0_64 = arith.constant 0 : index
    %76 = arith.index_cast %75 : i32 to index
    %c1_65 = arith.constant 1 : index
    %c0_66 = arith.constant 0 : index
    %77 = vector.load %arg3[%c0_63, %c0_64, %76, %c1_65, %c0_66] : memref<4x1x9x9x128xbf16, #tpu.memory_space<vmem>>, vector<1x1x8x8x128xbf16>
    %78 = vector.shape_cast %77 : vector<1x1x8x8x128xbf16> to vector<8x8x128xbf16>
    %79 = vector.shape_cast %78 : vector<8x8x128xbf16> to vector<64x128xbf16>
    %c8 = arith.constant 8 : index
    %c0_67 = arith.constant 0 : index
    %c0_68 = arith.constant 0 : index
    %80 = vector.load %arg4[%c8, %c0_67, %c0_68] : memref<9x128x128xbf16, #tpu.memory_space<vmem>>, vector<1x128x128xbf16>
    %81 = vector.shape_cast %80 : vector<1x128x128xbf16> to vector<128x128xbf16>
    %cst_69 = arith.constant dense<0.000000e+00> : vector<64x128xf32>
    %82 = tpu.matmul %79, %81, %cst_69 {dimension_numbers = #tpu.dot_dimension_numbers<[1], [0], [0], [1], [0, 0, 1, 1], [], []>} : vector<64x128xbf16>, vector<128x128xbf16>, vector<64x128xf32> -> vector<64x128xf32>
    %83 = arith.addf %74, %82 : vector<64x128xf32>
    %c0_70 = arith.constant 0 : index
    %c0_71 = arith.constant 0 : index
    %84 = vector.load %arg5[%c0_70, %c0_71] : memref<1x128xf32, #tpu.memory_space<vmem>>, vector<1x128xf32>
    %85 = vector.broadcast %84 : vector<1x128xf32> to vector<64x128xf32>
    %86 = arith.addf %83, %85 : vector<64x128xf32>
    %cst_72 = arith.constant 0.000000e+00 : f32
    %87 = vector.broadcast %cst_72 : f32 to vector<64x128xf32>
    %88 = arith.maximumf %86, %87 : vector<64x128xf32>
    %89 = vector.shape_cast %88 : vector<64x128xf32> to vector<1x64x128xf32>
    %90 = arith.truncf %89 : vector<1x64x128xf32> to vector<1x64x128xbf16>
    %c0_73 = arith.constant 0 : index
    %c0_74 = arith.constant 0 : index
    %c0_75 = arith.constant 0 : index
    %91 = vector.load %arg6[%c0_73, %c0_74, %c0_75] : memref<1x64x128xbf16, #tpu.memory_space<vmem>>, vector<1x64x128xbf16>
    tpu.vector_store %arg6[%c0_73, %c0_74, %c0_75], %90 {strides = array<i32>} : memref<1x64x128xbf16, #tpu.memory_space<vmem>>, vector<1x64x128xbf16>,
    return
  }
  func.func @transform_0(%arg0: i32, %arg1: i32, %arg2: i32) -> (i32, i32, i32, i32, i32) {
    %c0_i32 = arith.constant 0 : i32
    %c0_i32_0 = arith.constant 0 : i32
    %c0_i32_1 = arith.constant 0 : i32
    %c0_i32_2 = arith.constant 0 : i32
    %c0_i32_3 = arith.constant 0 : i32
    return %c0_i32, %arg0, %c0_i32_0, %c0_i32_1, %c0_i32_2 : i32, i32, i32, i32, i32
  }
  func.func @transform_1(%arg0: i32, %arg1: i32, %arg2: i32) -> (i32, i32, i32) {
    %c0_i32 = arith.constant 0 : i32
    %c0_i32_0 = arith.constant 0 : i32
    %c0_i32_1 = arith.constant 0 : i32
    return %c0_i32, %c0_i32_0, %arg1 : i32, i32, i32
  }
  func.func @transform_2(%arg0: i32, %arg1: i32, %arg2: i32) -> (i32, i32) {
    %c0_i32 = arith.constant 0 : i32
    %c0_i32_0 = arith.constant 0 : i32
    return %c0_i32, %arg1 : i32, i32
  }
  func.func @transform_3(%arg0: i32, %arg1: i32, %arg2: i32) -> (i32, i32, i32) {
    %c1_i32 = arith.constant 1 : i32
    %0 = arith.muli %arg0, %c1_i32 : i32
    %1 = arith.addi %0, %arg2 : i32
    %c0_i32 = arith.constant 0 : i32
    %c0_i32_0 = arith.constant 0 : i32
    return %1, %c0_i32, %arg1 : i32, i32, i32
  }
}

module attributes {stable_mosaic.version = 11 : i64} {
  func.func @_dual_matmul_bias_relu_kernel(%arg0: i32, %arg1: memref<64x128xbf16, #tpu.memory_space<vmem>>, %arg2: memref<128x128xbf16, #tpu.memory_space<vmem>>, %arg3: memref<1x128xf32, #tpu.memory_space<vmem>>, %arg4: memref<64x128xbf16, #tpu.memory_space<vmem>>, %arg5: memref<128x128xbf16, #tpu.memory_space<vmem>>, %arg6: memref<1x128xf32, #tpu.memory_space<vmem>>, %arg7: memref<64x128xbf16, #tpu.memory_space<vmem>>) attributes {dimension_semantics = [#tpu.dimension_semantics<parallel>], iteration_bounds = array<i64: 2>, scalar_prefetch = 0 : i64, scratch_operands = 0 : i64, tpu.core_type = #tpu.core_type<tc>, window_params = [{transform_indices = @transform_0, window_bounds = array<i64: 64, 128>}, {pipeline_mode = #tpu.pipeline_mode<synchronous>, transform_indices = @transform_1, window_bounds = array<i64: 128, 128>}, {pipeline_mode = #tpu.pipeline_mode<synchronous>, transform_indices = @transform_2, window_bounds = array<i64: 1, 128>}, {transform_indices = @transform_3, window_bounds = array<i64: 64, 128>}, {pipeline_mode = #tpu.pipeline_mode<synchronous>, transform_indices = @transform_4, window_bounds = array<i64: 128, 128>}, {pipeline_mode = #tpu.pipeline_mode<synchronous>, transform_indices = @transform_5, window_bounds = array<i64: 1, 128>}, {transform_indices = @transform_6, window_bounds = array<i64: 64, 128>}]} {
    %c0 = arith.constant 0 : index
    %c0_0 = arith.constant 0 : index
    %0 = vector.load %arg1[%c0, %c0_0] : memref<64x128xbf16, #tpu.memory_space<vmem>>, vector<64x128xbf16>
    %c0_1 = arith.constant 0 : index
    %c0_2 = arith.constant 0 : index
    %1 = vector.load %arg2[%c0_1, %c0_2] : memref<128x128xbf16, #tpu.memory_space<vmem>>, vector<128x128xbf16>
    %cst = arith.constant dense<0.000000e+00> : vector<64x128xf32>
    %2 = tpu.matmul %0, %1, %cst {dimension_numbers = #tpu.dot_dimension_numbers<[1], [0], [0], [1], [0, 0, 1, 1], [], []>} : vector<64x128xbf16>, vector<128x128xbf16>, vector<64x128xf32> -> vector<64x128xf32>
    %c0_3 = arith.constant 0 : index
    %c0_4 = arith.constant 0 : index
    %3 = vector.load %arg3[%c0_3, %c0_4] : memref<1x128xf32, #tpu.memory_space<vmem>>, vector<1x128xf32>
    %4 = vector.broadcast %3 : vector<1x128xf32> to vector<64x128xf32>
    %5 = arith.addf %2, %4 : vector<64x128xf32>
    %c0_5 = arith.constant 0 : index
    %c0_6 = arith.constant 0 : index
    %6 = vector.load %arg4[%c0_5, %c0_6] : memref<64x128xbf16, #tpu.memory_space<vmem>>, vector<64x128xbf16>
    %c0_7 = arith.constant 0 : index
    %c0_8 = arith.constant 0 : index
    %7 = vector.load %arg5[%c0_7, %c0_8] : memref<128x128xbf16, #tpu.memory_space<vmem>>, vector<128x128xbf16>
    %cst_9 = arith.constant dense<0.000000e+00> : vector<64x128xf32>
    %8 = tpu.matmul %6, %7, %cst_9 {dimension_numbers = #tpu.dot_dimension_numbers<[1], [0], [0], [1], [0, 0, 1, 1], [], []>} : vector<64x128xbf16>, vector<128x128xbf16>, vector<64x128xf32> -> vector<64x128xf32>
    %c0_10 = arith.constant 0 : index
    %c0_11 = arith.constant 0 : index
    %9 = vector.load %arg6[%c0_10, %c0_11] : memref<1x128xf32, #tpu.memory_space<vmem>>, vector<1x128xf32>
    %10 = vector.broadcast %9 : vector<1x128xf32> to vector<64x128xf32>
    %11 = arith.addf %8, %10 : vector<64x128xf32>
    %12 = arith.addf %5, %11 : vector<64x128xf32>
    %cst_12 = arith.constant 0.000000e+00 : f32
    %13 = vector.broadcast %cst_12 : f32 to vector<64x128xf32>
    %14 = arith.maximumf %12, %13 : vector<64x128xf32>
    %15 = arith.truncf %14 : vector<64x128xf32> to vector<64x128xbf16>
    %c0_13 = arith.constant 0 : index
    %c0_14 = arith.constant 0 : index
    %16 = vector.load %arg7[%c0_13, %c0_14] : memref<64x128xbf16, #tpu.memory_space<vmem>>, vector<64x128xbf16>
    tpu.vector_store %arg7[%c0_13, %c0_14], %15 {strides = array<i32>} : memref<64x128xbf16, #tpu.memory_space<vmem>>, vector<64x128xbf16>,
    return
  }
  func.func @transform_0(%arg0: i32) -> (i32, i32) {
    %c0_i32 = arith.constant 0 : i32
    %c0_i32_0 = arith.constant 0 : i32
    return %arg0, %c0_i32 : i32, i32
  }
  func.func @transform_1(%arg0: i32) -> (i32, i32) {
    %c0_i32 = arith.constant 0 : i32
    %c0_i32_0 = arith.constant 0 : i32
    %c0_i32_1 = arith.constant 0 : i32
    return %c0_i32, %c0_i32_0 : i32, i32
  }
  func.func @transform_2(%arg0: i32) -> (i32, i32) {
    %c0_i32 = arith.constant 0 : i32
    %c0_i32_0 = arith.constant 0 : i32
    %c0_i32_1 = arith.constant 0 : i32
    return %c0_i32, %c0_i32_0 : i32, i32
  }
  func.func @transform_3(%arg0: i32) -> (i32, i32) {
    %c0_i32 = arith.constant 0 : i32
    %c0_i32_0 = arith.constant 0 : i32
    return %arg0, %c0_i32 : i32, i32
  }
  func.func @transform_4(%arg0: i32) -> (i32, i32) {
    %c0_i32 = arith.constant 0 : i32
    %c0_i32_0 = arith.constant 0 : i32
    %c0_i32_1 = arith.constant 0 : i32
    return %c0_i32, %c0_i32_0 : i32, i32
  }
  func.func @transform_5(%arg0: i32) -> (i32, i32) {
    %c0_i32 = arith.constant 0 : i32
    %c0_i32_0 = arith.constant 0 : i32
    %c0_i32_1 = arith.constant 0 : i32
    return %c0_i32, %c0_i32_0 : i32, i32
  }
  func.func @transform_6(%arg0: i32) -> (i32, i32) {
    %c0_i32 = arith.constant 0 : i32
    %c0_i32_0 = arith.constant 0 : i32
    return %arg0, %c0_i32 : i32, i32
  }
}

</mosaic_0001>

<bundles_post_ra>
// kernel: bottleneck_forward.3
= control target key start
LH: loop header
LB: loop body
LE: loop exit
PB: predicated region body
PF: predicated region fallthrough
CT: control target
= control target key end

     0   :  { %s1126_s12 = smov 0   ;;  %s1247_s0 = inlined_call_operand.vmem [shape: bf16[512,128], index: 0, kind: input, shape index: {}]   ;;  %s1248_s1 = inlined_call_operand.vmem [shape: bf16[128,128], index: 1, kind: input, shape index: {}]   ;;  %s1249_s2 = inlined_call_operand.vmem [shape: f32[1,128], index: 2, kind: input, shape index: {}]   ;;  %s1250_s3 = inlined_call_operand.vmem [shape: bf16[512,128], index: 3, kind: output, shape index: {}]  }
   0x1 LB: > { %s783_s13 = sadd.s32 4294967295, %s1104_s12   ;;  %p787_p0 = scmp.ge.s32.totalorder %s1104_s12, 1  ;;  %s1104_s12 = sphi %s1126_s12, %s13_s12  }
   0x2   : > { %p138_p1 = scmp.lt.s32.totalorder %s1104_s12, 3 }
   0x4   : > { %p139_p2 = pnand %p787_p0, %p138_p1 }
   0x5   : > { %s788_s16 = sshll.u32 (!%p139_p2), %s783_s13, 5 }
   0x6   : > { %142 = sbr.rel (%p139_p2) target bundleno = 274 (0x112), region = 32  ;;  %p163_p3 = scmp.lt.s32.totalorder (!%p139_p2), %s788_s16, 63 }
   0xb   : > { %v1074_v0 = vld [vmem:[%s1248_s1 + $0x38] sm:$0xff]   ;;  %v1075_v1 = vld [vmem:[%s1248_s1 + $0x30] sm:$0xff]   ;;  %s1252_s16 = smov (!%p163_p3, %s788_s16), 63  ;;  %v1076_v2 = vld [vmem:[%s1248_s1 + $0x28] sm:$0xff]  }
   0xc   : > { %1002 = vmatprep.subr.bf16.mxu0 %v1074_v0  ;;  %1050 = vmatprep.subr.bf16.mxu1 %v1074_v0  ;;  %s789_s21 = sshll.u32 %s1252_s16, 2  ;;  %v1077_v3 = vld [vmem:[%s1248_s1 + $0x20] sm:$0xff]   ;;  %v1078_v6 = vld [vmem:[%s1248_s1 + $0x18] sm:$0xff]   ;;  %v1079_v7 = vld [vmem:[%s1248_s1 + $0x10] sm:$0xff]  }
   0xd   : > { %1003 = vmatpush3.bf16.msra.mxu0 %v1074_v0  ;;  %1058 = vmatpush3.bf16.msra.mxu1 %v1074_v0  ;;  %s1151_s24 = scalar_lea.vmem %s1247_s0, %s789_s21  ;;  %v1080_v8 = vld [vmem:[%s1248_s1 + $0x8] sm:$0xff]   ;;  %v1081_v9 = vld [vmem:[%s1248_s1] sm:$0xff]   ;;  %s1202_s13 = scalar_lea.vmem %s1250_s3, %s789_s21 }
   0xe   : > { %1004 = vmatprep.subr.bf16.mxu0 %v1075_v1  ;;  %1051 = vmatprep.subr.bf16.mxu1 %v1075_v1  ;;  %v1082_v4 = vld [vmem:[%s1151_s24] sm:$0xff]   ;;  %v1084_v10 = vld [vmem:[%s1151_s24 + $0x8] sm:$0xff]   ;;  %v1086_v12 = vld [vmem:[%s1151_s24 + $0x10] sm:$0xff]  }
   0xf   : > { %v1083_v5 = vld [vmem:[%s1151_s24 + $0x40] sm:$0xff]   ;;  %1018 = vmatprep.mubr.bf16.mxu0 %v1082_v4  ;;  %v1085_v11 = vld [vmem:[%s1151_s24 + $0x48] sm:$0xff]   ;;  %v1087_v13 = vld [vmem:[%s1151_s24 + $0x50] sm:$0xff]  }
  0x10   : > { %1034 = vmatprep.mubr.bf16.mxu1 %v1083_v5  ;;  %v1088_v14 = vld [vmem:[%s1151_s24 + $0x18] sm:$0xff]   ;;  %v1090_v16 = vld [vmem:[%s1151_s24 + $0x20] sm:$0xff]   ;;  %v1092_v18 = vld [vmem:[%s1151_s24 + $0x28] sm:$0xff]  }
  0x11   : > { %1005 = vmatpush3.bf16.msra.mxu0 %v1075_v1  ;;  %1059 = vmatpush3.bf16.msra.mxu1 %v1075_v1  ;;  %v1089_v15 = vld [vmem:[%s1151_s24 + $0x58] sm:$0xff]   ;;  %v1091_v17 = vld [vmem:[%s1151_s24 + $0x60] sm:$0xff]   ;;  %v1093_v19 = vld [vmem:[%s1151_s24 + $0x68] sm:$0xff]  }
  0x12   : > { %1006 = vmatprep.subr.bf16.mxu0 %v1076_v2  ;;  %1052 = vmatprep.subr.bf16.mxu1 %v1076_v2  ;;  %v1094_v20 = vld [vmem:[%s1151_s24 + $0x30] sm:$0xff]   ;;  %v1096_v22 = vld [vmem:[%s1151_s24 + $0x38] sm:$0xff]   ;;  %v1187_v24 = vld [vmem:[%s1249_s2] ss:$0 sm:$0xff] }
  0x13   : > { %v1095_v21 = vld [vmem:[%s1151_s24 + $0x70] sm:$0xff]   ;;  %v1097_v23 = vld [vmem:[%s1151_s24 + $0x78] sm:$0xff]  }
  0x15   : > { %1007 = vmatpush3.bf16.msra.mxu0 %v1076_v2  ;;  %1060 = vmatpush3.bf16.msra.mxu1 %v1076_v2 }
  0x16   : > { %1008 = vmatprep.subr.bf16.mxu0 %v1077_v3  ;;  %1053 = vmatprep.subr.bf16.mxu1 %v1077_v3 }
  0x19   : > { %1009 = vmatpush3.bf16.msra.mxu0 %v1077_v3  ;;  %1061 = vmatpush3.bf16.msra.mxu1 %v1077_v3 }
  0x1a   : > { %1010 = vmatprep.subr.bf16.mxu0 %v1078_v6  ;;  %1054 = vmatprep.subr.bf16.mxu1 %v1078_v6 }
  0x1d   : > { %1011 = vmatpush3.bf16.msra.mxu0 %v1078_v6  ;;  %1062 = vmatpush3.bf16.msra.mxu1 %v1078_v6 }
  0x1e   : > { %1012 = vmatprep.subr.bf16.mxu0 %v1079_v7  ;;  %1055 = vmatprep.subr.bf16.mxu1 %v1079_v7 }
  0x21   : > { %1013 = vmatpush3.bf16.msra.mxu0 %v1079_v7  ;;  %1063 = vmatpush3.bf16.msra.mxu1 %v1079_v7 }
  0x22   : > { %1014 = vmatprep.subr.bf16.mxu0 %v1080_v8  ;;  %1056 = vmatprep.subr.bf16.mxu1 %v1080_v8 }
  0x25   : > { %1015 = vmatpush3.bf16.msra.mxu0 %v1080_v8  ;;  %1064 = vmatpush3.bf16.msra.mxu1 %v1080_v8 }
  0x26   : > { %1016 = vmatprep.subr.bf16.mxu0 %v1081_v9  ;;  %1057 = vmatprep.subr.bf16.mxu1 %v1081_v9 }
  0x29   : > { %1017 = vmatpush3.bf16.msra.mxu0 %v1081_v9  ;;  %1065 = vmatpush3.bf16.msra.mxu1 %v1081_v9 }
  0x2c   : > { %1019 = vmatmul.mubr.bf16.vlgmr.msra.gmra.mxu0 %v1084_v10  ;;  %1035 = vmatmul.mubr.bf16.vlgmr.msra.gmra.mxu1 %v1085_v11 }
  0x2d   : > { %1022 = vmatprep.mubr.bf16.mxu0 %v1086_v12  ;;  %1038 = vmatprep.mubr.bf16.mxu1 %v1087_v13 }
  0x34   : > { %1023 = vmatmul.mubr.bf16.gmra.mxu0 %v1088_v14  ;;  %1039 = vmatmul.mubr.bf16.gmra.mxu1 %v1089_v15 }
  0x35   : > { %1026 = vmatprep.mubr.bf16.mxu0 %v1090_v16  ;;  %1042 = vmatprep.mubr.bf16.mxu1 %v1091_v17 }
  0x3c   : > { %1027 = vmatmul.mubr.bf16.gmra.mxu0 %v1092_v18  ;;  %1043 = vmatmul.mubr.bf16.gmra.mxu1 %v1093_v19 }
  0x3d   : > { %1030 = vmatprep.mubr.bf16.mxu0 %v1094_v20  ;;  %1046 = vmatprep.mubr.bf16.mxu1 %v1095_v21 }
  0x44   : > { %1031 = vmatmul.mubr.bf16.gmra.mxu0 %v1096_v22  ;;  %1047 = vmatmul.mubr.bf16.gmra.mxu1 %v1097_v23 }
  0xec   : > { %v1020_v25 = vpop.f32.mrf.mxu0  ;;  %v1036_v26 = vpop.f32.mrf.mxu1 }
  0xed   : > { %v417_v27 = vadd.f32 %v1020_v25, %v1187_v24  ;;  %v481_v28 = vadd.f32 %v1036_v26, %v1187_v24 }
  0xee   : > { %v408_v29 = vpop.f32.mrf.mxu0  ;;  %v472_v30 = vpop.f32.mrf.mxu1 }
  0xef   : > { %v409_v31 = vadd.f32 %v1187_v24, %v408_v29  ;;  %v473_v32 = vadd.f32 %v1187_v24, %v472_v30  ;;  %v537_v37 = vmax.f32 %v417_v27, 0.0  ;;  %v553_v38 = vmax.f32 %v481_v28, 0.0 }
  0xf0   : > { %v1021_v33 = vpop.f32.mrf.mxu0  ;;  %v1037_v34 = vpop.f32.mrf.mxu1 }
  0xf1   : > { %v420_v35 = vadd.f32 %v1021_v33, %v1187_v24  ;;  %v484_v36 = vadd.f32 %v1037_v34, %v1187_v24  ;;  %v535_v45 = vmax.f32 %v409_v31, 0.0  ;;  %v551_v46 = vmax.f32 %v473_v32, 0.0 }
  0xf2   : > { %v411_v39 = vpop.f32.mrf.mxu0  ;;  %v475_v40 = vpop.f32.mrf.mxu1 }
  0xf3   : > { %v538_v41 = vmax.f32 %v420_v35, 0.0  ;;  %v554_v42 = vmax.f32 %v484_v36, 0.0  ;;  %v412_v43 = vadd.f32 %v1187_v24, %v411_v39  ;;  %v476_v44 = vadd.f32 %v1187_v24, %v475_v40 }
  0xf4   : > { %v1024_v47 = vpop.f32.mrf.mxu0  ;;  %v1040_v48 = vpop.f32.mrf.mxu1 }
  0xf5   : > { %v891_v49 = vpack.c.bf16 %v538_v41, %v537_v37  ;;  %v931_v50 = vpack.c.bf16 %v554_v42, %v553_v38  ;;  %v536_v51 = vmax.f32 %v412_v43, 0.0  ;;  %v552_v52 = vmax.f32 %v476_v44, 0.0 }
  0xf6   : > { %v433_v53 = vadd.f32 %v1024_v47, %v1187_v24  ;;  %v497_v54 = vadd.f32 %v1040_v48, %v1187_v24  ;;  %v424_v55 = vpop.f32.mrf.mxu0  ;;  %v488_v56 = vpop.f32.mrf.mxu1 }
  0xf7   : > { %963 = vst [vmem:[%s1202_s13 + $0x8] sm:$0xff] %v891_v49   ;;  %971 = vst [vmem:[%s1202_s13 + $0x48] sm:$0xff] %v931_v50   ;;  %v886_v57 = vpack.c.bf16 %v536_v51, %v535_v45  ;;  %v926_v58 = vpack.c.bf16 %v552_v52, %v551_v46  ;;  %v425_v59 = vadd.f32 %v1187_v24, %v424_v55 }
  0xf8   : > { %v489_v60 = vadd.f32 %v1187_v24, %v488_v56  ;;  %v1025_v61 = vpop.f32.mrf.mxu0  ;;  %v1041_v62 = vpop.f32.mrf.mxu1  ;;  %v541_v1 = vmax.f32 %v433_v53, 0.0  ;;  %v557_v2 = vmax.f32 %v497_v54, 0.0 }
  0xf9   : > { %887 = vst [vmem:[%s1202_s13] sm:$0xff] %v886_v57   ;;  %970 = vst [vmem:[%s1202_s13 + $0x40] sm:$0xff] %v926_v58   ;;  %v436_v63 = vadd.f32 %v1025_v61, %v1187_v24  ;;  %v500_v0 = vadd.f32 %v1041_v62, %v1187_v24  ;;  %v539_v9 = vmax.f32 %v425_v59, 0.0 }
  0xfa   : > { %v427_v3 = vpop.f32.mrf.mxu0  ;;  %v491_v4 = vpop.f32.mrf.mxu1  ;;  %v555_v10 = vmax.f32 %v489_v60, 0.0 }
  0xfb   : > { %v542_v5 = vmax.f32 %v436_v63, 0.0  ;;  %v558_v6 = vmax.f32 %v500_v0, 0.0  ;;  %v428_v7 = vadd.f32 %v1187_v24, %v427_v3  ;;  %v492_v8 = vadd.f32 %v1187_v24, %v491_v4 }
  0xfc   : > { %v1028_v11 = vpop.f32.mrf.mxu0  ;;  %v1044_v12 = vpop.f32.mrf.mxu1 }
  0xfd   : > { %v901_v13 = vpack.c.bf16 %v542_v5, %v541_v1  ;;  %v941_v14 = vpack.c.bf16 %v558_v6, %v557_v2  ;;  %v540_v15 = vmax.f32 %v428_v7, 0.0  ;;  %v556_v16 = vmax.f32 %v492_v8, 0.0 }
  0xfe   : > { %v449_v17 = vadd.f32 %v1028_v11, %v1187_v24  ;;  %v513_v18 = vadd.f32 %v1044_v12, %v1187_v24  ;;  %v440_v19 = vpop.f32.mrf.mxu0  ;;  %v504_v20 = vpop.f32.mrf.mxu1 }
  0xff   : > { %965 = vst [vmem:[%s1202_s13 + $0x18] sm:$0xff] %v901_v13   ;;  %973 = vst [vmem:[%s1202_s13 + $0x58] sm:$0xff] %v941_v14   ;;  %v896_v21 = vpack.c.bf16 %v540_v15, %v539_v9  ;;  %v936_v22 = vpack.c.bf16 %v556_v16, %v555_v10  ;;  %v441_v23 = vadd.f32 %v1187_v24, %v440_v19 }
 0x100   : > { %v505_v25 = vadd.f32 %v1187_v24, %v504_v20  ;;  %v1029_v26 = vpop.f32.mrf.mxu0  ;;  %v1045_v27 = vpop.f32.mrf.mxu1  ;;  %v545_v30 = vmax.f32 %v449_v17, 0.0  ;;  %v561_v31 = vmax.f32 %v513_v18, 0.0 }
 0x101   : > { %964 = vst [vmem:[%s1202_s13 + $0x10] sm:$0xff] %v896_v21   ;;  %972 = vst [vmem:[%s1202_s13 + $0x50] sm:$0xff] %v936_v22   ;;  %v452_v28 = vadd.f32 %v1029_v26, %v1187_v24  ;;  %v516_v29 = vadd.f32 %v1045_v27, %v1187_v24  ;;  %v543_v38 = vmax.f32 %v441_v23, 0.0 }
 0x102   : > { %v443_v32 = vpop.f32.mrf.mxu0  ;;  %v507_v33 = vpop.f32.mrf.mxu1  ;;  %v559_v39 = vmax.f32 %v505_v25, 0.0 }
 0x103   : > { %v546_v34 = vmax.f32 %v452_v28, 0.0  ;;  %v562_v35 = vmax.f32 %v516_v29, 0.0  ;;  %v444_v36 = vadd.f32 %v1187_v24, %v443_v32  ;;  %v508_v37 = vadd.f32 %v1187_v24, %v507_v33 }
 0x104   : > { %v1032_v40 = vpop.f32.mrf.mxu0  ;;  %v1048_v41 = vpop.f32.mrf.mxu1 }
 0x105   : > { %v911_v42 = vpack.c.bf16 %v546_v34, %v545_v30  ;;  %v951_v43 = vpack.c.bf16 %v562_v35, %v561_v31  ;;  %v544_v44 = vmax.f32 %v444_v36, 0.0  ;;  %v560_v45 = vmax.f32 %v508_v37, 0.0 }
 0x106   : > { %v465_v46 = vadd.f32 %v1032_v40, %v1187_v24  ;;  %v529_v47 = vadd.f32 %v1048_v41, %v1187_v24  ;;  %v456_v48 = vpop.f32.mrf.mxu0  ;;  %v520_v49 = vpop.f32.mrf.mxu1 }
 0x107   : > { %967 = vst [vmem:[%s1202_s13 + $0x28] sm:$0xff] %v911_v42   ;;  %975 = vst [vmem:[%s1202_s13 + $0x68] sm:$0xff] %v951_v43   ;;  %v906_v50 = vpack.c.bf16 %v544_v44, %v543_v38  ;;  %v946_v51 = vpack.c.bf16 %v560_v45, %v559_v39  ;;  %v457_v52 = vadd.f32 %v1187_v24, %v456_v48 }
 0x108   : > { %v521_v53 = vadd.f32 %v1187_v24, %v520_v49  ;;  %v1033_v54 = vpop.f32.mrf.mxu0  ;;  %v1049_v55 = vpop.f32.mrf.mxu1  ;;  %v549_v58 = vmax.f32 %v465_v46, 0.0  ;;  %v565_v59 = vmax.f32 %v529_v47, 0.0 }
 0x109   : > { %966 = vst [vmem:[%s1202_s13 + $0x20] sm:$0xff] %v906_v50   ;;  %974 = vst [vmem:[%s1202_s13 + $0x60] sm:$0xff] %v946_v51   ;;  %v468_v56 = vadd.f32 %v1033_v54, %v1187_v24  ;;  %v532_v57 = vadd.f32 %v1049_v55, %v1187_v24  ;;  %v547_v2 = vmax.f32 %v457_v52, 0.0 }
 0x10a   : > { %v459_v60 = vpop.f32.mrf.mxu0  ;;  %v523_v61 = vpop.f32.mrf.mxu1  ;;  %v563_v3 = vmax.f32 %v521_v53, 0.0 }
 0x10b   : > { %v550_v62 = vmax.f32 %v468_v56, 0.0  ;;  %v566_v63 = vmax.f32 %v532_v57, 0.0  ;;  %v460_v0 = vadd.f32 %v1187_v24, %v459_v60  ;;  %v524_v1 = vadd.f32 %v1187_v24, %v523_v61 }
 0x10d   : > { %v921_v4 = vpack.c.bf16 %v550_v62, %v549_v58  ;;  %v961_v5 = vpack.c.bf16 %v566_v63, %v565_v59  ;;  %v548_v6 = vmax.f32 %v460_v0, 0.0  ;;  %v564_v7 = vmax.f32 %v524_v1, 0.0 }
 0x10f   : > { %969 = vst [vmem:[%s1202_s13 + $0x38] sm:$0xff] %v921_v4   ;;  %977 = vst [vmem:[%s1202_s13 + $0x78] sm:$0xff] %v961_v5   ;;  %v916_v8 = vpack.c.bf16 %v548_v6, %v547_v2  ;;  %v956_v9 = vpack.c.bf16 %v564_v7, %v563_v3 }
 0x111   : > { %968 = vst [vmem:[%s1202_s13 + $0x30] sm:$0xff] %v916_v8   ;;  %976 = vst [vmem:[%s1202_s13 + $0x70] sm:$0xff] %v956_v9  }
 0x112 PF: > { %s13_s12 = sadd.s32 1, %s1104_s12  }
 0x113   : > { %p10_p4 = scmp.ge.s32.totalorder %s13_s12, 4  }
 0x115   :  { %12 = sbr.rel (!%p10_p4) target bundleno = 1 (0x1), region = 62 }

// kernel: bottleneck_forward.4
= control target key start
LH: loop header
LB: loop body
LE: loop exit
PB: predicated region body
PF: predicated region fallthrough
CT: control target
= control target key end

     0   :  { %s3538_s12 = smov 0   ;;  %s3540_s13 = smov 0   ;;  %s4044_s0 = inlined_call_operand.vmem [shape: bf16[4,2,9,9,128], index: 0, kind: input, shape index: {}]   ;;  %s4045_s1 = inlined_call_operand.vmem [shape: bf16[9,128,128], index: 1, kind: input, shape index: {}]   ;;  %s4046_s2 = inlined_call_operand.vmem [shape: f32[1,128], index: 2, kind: input, shape index: {}]   ;;  %s4047_s3 = inlined_call_operand.vmem [shape: bf16[2,64,128], index: 3, kind: output, shape index: {}]  }
   0x1   :  { %s3542_s14 = smov 0   ;;  %s3544_s15 = smov 0  }
   0x2   :  { %s3546_s16 = smov 0  }
   0x3 LB: > { %s32_s17 = sadd.s32 1, %s3512_s15  ;;  %p46_p1 = scmp.ne.s32.totalorder %s3504_s13, %s3500_s12  ;;  %s3516_s16 = sphi %s3546_s16, %s13_s16   ;;  %s3512_s15 = sphi %s3544_s15, %s4061_s15   ;;  %s3508_s14 = sphi %s3542_s14, %s4060_s14   ;;  %s3504_s13 = sphi %s3540_s13, %s4059_s13   ;;  %s3500_s12 = sphi %s3538_s12, %s4058_s12  }
   0x4   : > { %p34_p0 = scmp.ge.s32.totalorder %s32_s17, 2  ;;  %p47_p2 = scmp.eq.s32.totalorder %s3516_s16, 0 }
   0x5   : > { %s39_s19 = sadd.s32 1, %s3504_s13  ;;  %p2643_p5 = scmp.ge.s32.totalorder %s3516_s16, 2 }
   0x6   : > { %s4063_s17 = smov (%p34_p0, %s32_s17), 0  ;;  %p48_p3 = por %p47_p2, %p46_p1 }
   0x7   : > { %s36_s18 = ssub.s32 %s3512_s15, %s4063_s17  ;;  %167 = sbr.rel (%p2643_p5) target bundleno = 35 (0x23), region = 24 }
   0x8   : > { %p37_p4 = scmp.eq.s32.totalorder %s36_s18, 0 }
   0xa   : > { %s3573_s20 = scalar_select %p37_p4, %s3504_s13, %s39_s19  }
   0xc   : > { %170 = sbr.rel (!%p48_p3) target bundleno = 35 (0x23), region = 28  ;;  %s172_s21 = sand.u32 (%p48_p3), 1, %s3504_s13  }
   0xd   : > { %s3340_s22 = smul.u32 (%p48_p3), 72, %s3512_s15 }
   0xe   : > { %s3339_s23 = smul.u32 (%p48_p3), 288, %s172_s21 }
   0xf   : > { %s3581_s26 = scalar_lea.vmem (%p48_p3), %s4044_s0, %s3340_s22 }
  0x10   : > { %v194_v0 = vld [vmem:[%s3581_s26] sm:$0xff] (%p48_p3)   ;;  %v198_v1 = vld [vmem:[%s3581_s26 + $0x8] sm:$0xff] (%p48_p3)   ;;  %v202_v2 = vld [vmem:[%s3581_s26 + $0x10] sm:$0xff] (%p48_p3)   ;;  %s3586_s27 = scalar_lea.vmem (%p48_p3), [#allocation2], %s3339_s23 }
  0x11   : > { %195 = vst [vmem:[%s3586_s27] sm:$0xff] %v194_v0   ;;  %199 = vst [vmem:[%s3586_s27 + $0x8] sm:$0xff] %v198_v1   ;;  %v206_v3 = vld [vmem:[%s3581_s26 + $0x18] sm:$0xff]   ;;  %v210_v4 = vld [vmem:[%s3581_s26 + $0x20] sm:$0xff]  }
  0x12   : > { %203 = vst [vmem:[%s3586_s27 + $0x10] sm:$0xff] %v202_v2   ;;  %v214_v5 = vld [vmem:[%s3581_s26 + $0x28] sm:$0xff]   ;;  %207 = vst [vmem:[%s3586_s27 + $0x18] sm:$0xff] %v206_v3   ;;  %v218_v6 = vld [vmem:[%s3581_s26 + $0x30] sm:$0xff]  }
  0x13   : > { %211 = vst [vmem:[%s3586_s27 + $0x20] sm:$0xff] %v210_v4   ;;  %215 = vst [vmem:[%s3586_s27 + $0x28] sm:$0xff] %v214_v5   ;;  %v222_v7 = vld [vmem:[%s3581_s26 + $0x38] sm:$0xff]   ;;  %v226_v8 = vld [vmem:[%s3581_s26 + $0x40] sm:$0xff]  }
  0x14   : > { %219 = vst [vmem:[%s3586_s27 + $0x30] sm:$0xff] %v218_v6   ;;  %223 = vst [vmem:[%s3586_s27 + $0x38] sm:$0xff] %v222_v7   ;;  %v230_v9 = vld [vmem:[%s3581_s26 + $0x90] sm:$0xff]   ;;  %v234_v10 = vld [vmem:[%s3581_s26 + $0x98] sm:$0xff]  }
  0x15   : > { %227 = vst [vmem:[%s3586_s27 + $0x40] sm:$0xff] %v226_v8   ;;  %v238_v11 = vld [vmem:[%s3581_s26 + $0xa0] sm:$0xff]   ;;  %231 = vst [vmem:[%s3586_s27 + $0x48] sm:$0xff] %v230_v9   ;;  %v242_v12 = vld [vmem:[%s3581_s26 + $0xa8] sm:$0xff]  }
  0x16   : > { %235 = vst [vmem:[%s3586_s27 + $0x50] sm:$0xff] %v234_v10   ;;  %239 = vst [vmem:[%s3586_s27 + $0x58] sm:$0xff] %v238_v11   ;;  %v246_v13 = vld [vmem:[%s3581_s26 + $0xb0] sm:$0xff]   ;;  %v250_v14 = vld [vmem:[%s3581_s26 + $0xb8] sm:$0xff]  }
  0x17   : > { %243 = vst [vmem:[%s3586_s27 + $0x60] sm:$0xff] %v242_v12   ;;  %247 = vst [vmem:[%s3586_s27 + $0x68] sm:$0xff] %v246_v13   ;;  %v254_v15 = vld [vmem:[%s3581_s26 + $0xc0] sm:$0xff]   ;;  %v258_v16 = vld [vmem:[%s3581_s26 + $0xc8] sm:$0xff]  }
  0x18   : > { %251 = vst [vmem:[%s3586_s27 + $0x70] sm:$0xff] %v250_v14   ;;  %v262_v17 = vld [vmem:[%s3581_s26 + $0xd0] sm:$0xff]   ;;  %255 = vst [vmem:[%s3586_s27 + $0x78] sm:$0xff] %v254_v15   ;;  %v266_v18 = vld [vmem:[%s3581_s26 + $0x120] sm:$0xff]  }
  0x19   : > { %259 = vst [vmem:[%s3586_s27 + $0x80] sm:$0xff] %v258_v16   ;;  %263 = vst [vmem:[%s3586_s27 + $0x88] sm:$0xff] %v262_v17   ;;  %v270_v19 = vld [vmem:[%s3581_s26 + $0x128] sm:$0xff]   ;;  %v274_v20 = vld [vmem:[%s3581_s26 + $0x130] sm:$0xff]  }
  0x1a   : > { %267 = vst [vmem:[%s3586_s27 + $0x90] sm:$0xff] %v266_v18   ;;  %271 = vst [vmem:[%s3586_s27 + $0x98] sm:$0xff] %v270_v19   ;;  %v278_v21 = vld [vmem:[%s3581_s26 + $0x138] sm:$0xff]   ;;  %v282_v22 = vld [vmem:[%s3581_s26 + $0x140] sm:$0xff]  }
  0x1b   : > { %275 = vst [vmem:[%s3586_s27 + $0xa0] sm:$0xff] %v274_v20   ;;  %v286_v23 = vld [vmem:[%s3581_s26 + $0x148] sm:$0xff]   ;;  %279 = vst [vmem:[%s3586_s27 + $0xa8] sm:$0xff] %v278_v21   ;;  %v290_v24 = vld [vmem:[%s3581_s26 + $0x150] sm:$0xff]  }
  0x1c   : > { %283 = vst [vmem:[%s3586_s27 + $0xb0] sm:$0xff] %v282_v22   ;;  %287 = vst [vmem:[%s3586_s27 + $0xb8] sm:$0xff] %v286_v23   ;;  %v294_v25 = vld [vmem:[%s3581_s26 + $0x158] sm:$0xff]   ;;  %v298_v26 = vld [vmem:[%s3581_s26 + $0x160] sm:$0xff]  }
  0x1d   : > { %291 = vst [vmem:[%s3586_s27 + $0xc0] sm:$0xff] %v290_v24   ;;  %295 = vst [vmem:[%s3586_s27 + $0xc8] sm:$0xff] %v294_v25   ;;  %v302_v27 = vld [vmem:[%s3581_s26 + $0x1b0] sm:$0xff]   ;;  %v306_v28 = vld [vmem:[%s3581_s26 + $0x1b8] sm:$0xff]  }
  0x1e   : > { %299 = vst [vmem:[%s3586_s27 + $0xd0] sm:$0xff] %v298_v26   ;;  %v310_v29 = vld [vmem:[%s3581_s26 + $0x1c0] sm:$0xff]   ;;  %303 = vst [vmem:[%s3586_s27 + $0xd8] sm:$0xff] %v302_v27   ;;  %v314_v30 = vld [vmem:[%s3581_s26 + $0x1c8] sm:$0xff]  }
  0x1f   : > { %307 = vst [vmem:[%s3586_s27 + $0xe0] sm:$0xff] %v306_v28   ;;  %311 = vst [vmem:[%s3586_s27 + $0xe8] sm:$0xff] %v310_v29   ;;  %v318_v31 = vld [vmem:[%s3581_s26 + $0x1d0] sm:$0xff]   ;;  %v322_v32 = vld [vmem:[%s3581_s26 + $0x1d8] sm:$0xff]  }
  0x20   : > { %315 = vst [vmem:[%s3586_s27 + $0xf0] sm:$0xff] %v314_v30   ;;  %319 = vst [vmem:[%s3586_s27 + $0xf8] sm:$0xff] %v318_v31   ;;  %v326_v33 = vld [vmem:[%s3581_s26 + $0x1e0] sm:$0xff]   ;;  %v330_v34 = vld [vmem:[%s3581_s26 + $0x1e8] sm:$0xff]  }
  0x21   : > { %323 = vst [vmem:[%s3586_s27 + $0x100] sm:$0xff] %v322_v32   ;;  %v334_v35 = vld [vmem:[%s3581_s26 + $0x1f0] sm:$0xff]   ;;  %327 = vst [vmem:[%s3586_s27 + $0x108] sm:$0xff] %v326_v33  }
  0x22   : > { %331 = vst [vmem:[%s3586_s27 + $0x110] sm:$0xff] %v330_v34   ;;  %335 = vst [vmem:[%s3586_s27 + $0x118] sm:$0xff] %v334_v35  }
  0x23 PF: > { %p2645_p6 = scmp.ge.s32.totalorder %s3516_s16, 1  ;;  %p504_p7 = scmp.lt.s32.totalorder %s3516_s16, 3 }
  0x25   : > { %p505_p8 = pnand %p2645_p6, %p504_p7 }
  0x27   : > { %508 = sbr.rel (%p505_p8) target bundleno = 414 (0x19e), region = 69 }
  0x2c   : > { %v3382_v36 = vld [vmem:[%s4045_s1 + $0x78] sm:$0xff]   ;;  %v3384_v38 = vld [vmem:[%s4045_s1 + $0x70] sm:$0xff]   ;;  %v3386_v40 = vld [vmem:[%s4045_s1 + $0x68] sm:$0xff]   ;;  %s511_s19 = sand.u32 1, %s3500_s12   ;;  %vm909_vm0 = vsmask.f32 3328 }
  0x2d   : > { %v3383_v37 = vld [vmem:[%s4045_s1 + $0x38] sm:$0xff]   ;;  %3107 = vmatprep.subr.bf16.mxu0 %v3382_v36  ;;  %v3385_v39 = vld [vmem:[%s4045_s1 + $0x30] sm:$0xff]   ;;  %v3387_v41 = vld [vmem:[%s4045_s1 + $0x28] sm:$0xff]   ;;  %s3341_s25 = smul.u32 288, %s511_s19  ;;  %vm910_vm1 = vsmask.f32 7440 }
  0x2e   : > { %3131 = vmatprep.subr.bf16.mxu1 %v3383_v37  ;;  %3108 = vmatpush3.bf16.msra.mxu0 %v3382_v36  ;;  %v3388_v42 = vld [vmem:[%s4045_s1 + $0x60] sm:$0xff]   ;;  %v3390_v44 = vld [vmem:[%s4045_s1 + $0x58] sm:$0xff]   ;;  %v3392_v46 = vld [vmem:[%s4045_s1 + $0x50] sm:$0xff]   ;;  %p553_p9 = scmp.lt.s32.totalorder %s3508_s14, 1 }
  0x2f   : > { %3132 = vmatpush3.bf16.msra.mxu1 %v3383_v37  ;;  %3109 = vmatprep.subr.bf16.mxu0 %v3384_v38  ;;  %v3389_v43 = vld [vmem:[%s4045_s1 + $0x20] sm:$0xff]   ;;  %v3391_v45 = vld [vmem:[%s4045_s1 + $0x18] sm:$0xff]   ;;  %v3393_v47 = vld [vmem:[%s4045_s1 + $0x10] sm:$0xff]   ;;  %s3696_s6 = scalar_lea.vmem [#allocation2], %s3341_s25 }
  0x30   : > { %3133 = vmatprep.subr.bf16.mxu1 %v3385_v39  ;;  %v3398_v48 = vld [vmem:[%s3696_s6 + $0x48] ss:$8 sps:$4 sm:$0xff]   ;;  %v3396_v52 = vld [vmem:[%s4045_s1 + $0x40] sm:$0xff]   ;;  %v3402_v55 = vld [vmem:[%s4045_s1 + $0xb8] sm:$0xff]   ;;  %s4065_s14 = smov (!%p553_p9, %s3508_s14), 1 }
  0x31   : > { %v3399_v49 = vld [vmem:[%s3696_s6] ss:$8 sps:$4 sm:$0xff]   ;;  %3123 = vmatprep.mubr.bf16.mxu0 %v3398_v48  ;;  %v3403_v56 = vld [vmem:[%s4045_s1 + $0xf8] sm:$0xff]   ;;  %v3404_v58 = vld [vmem:[%s4045_s1 + $0xb0] sm:$0xff]   ;;  %s2967_s8 = sshll.u32 %s4065_s14, 5 }
  0x32   : > { %3110 = vmatpush3.bf16.msra.mxu0 %v3384_v38  ;;  %3147 = vmatprep.mubr.bf16.mxu1 %v3399_v49  ;;  %v3394_v50 = vld [vmem:[%s4045_s1 + $0x48] sm:$0xff]   ;;  %v3397_v53 = vld [vmem:[%s4045_s1] sm:$0xff]   ;;  %v3401_v57 = vld [vmem:[%s3696_s6 + $0x10] ss:$8 sps:$4 sm:$0xff]   ;;  %s560_s11 = scalar_lea.vmem %s4047_s3, %s2967_s8 }
  0x33   : > { %3134 = vmatpush3.bf16.msra.mxu1 %v3385_v39  ;;  %3111 = vmatprep.subr.bf16.mxu0 %v3386_v40  ;;  %v3395_v51 = vld [vmem:[%s4045_s1 + $0x8] sm:$0xff]   ;;  %v3400_v54 = vld [vmem:[%s3696_s6 + $0x58] ss:$8 sps:$4 sm:$0xff]   ;;  %v3405_v59 = vld [vmem:[%s4045_s1 + $0xf0] sm:$0xff]  }
  0x34   : > { %3135 = vmatprep.subr.bf16.mxu1 %v3387_v41  ;;  %v3412_v60 = vld [vmem:[%s3696_s6 + $0x68] ss:$8 sps:$4 sm:$0xff]   ;;  %v3408_v0 = vld [vmem:[%s4045_s1 + $0xa0] sm:$0xff]   ;;  %v896_v7 = vld [vmem:[%s3696_s6 + $0xc] sm:$0x1] }
  0x35   : > { %v3413_v61 = vld [vmem:[%s3696_s6 + $0x20] ss:$8 sps:$4 sm:$0xff]   ;;  %v3415_v3 = vld [vmem:[%s3696_s6 + $0x30] ss:$8 sps:$4 sm:$0xff]   ;;  %v894_v5 = vld [vmem:[%s3696_s6 + $0x4] sm:$0x1] }
  0x36   : > { %3112 = vmatpush3.bf16.msra.mxu0 %v3386_v40  ;;  %v3406_v62 = vld [vmem:[%s4045_s1 + $0xa8] sm:$0xff]   ;;  %v3414_v1 = vld [vmem:[%s3696_s6 + $0x78] ss:$8 sps:$4 sm:$0xff]   ;;  %v922_v11 = vshll.u32 %v894_v5, 16  ;;  %v936_v14 = vshll.u32 %v896_v7, 16  ;;  %v3416_v30 = vld [vmem:[%s4045_s1 + $0x90] sm:$0xff]  }
  0x37   : > { %3136 = vmatpush3.bf16.msra.mxu1 %v3387_v41  ;;  %3113 = vmatprep.subr.bf16.mxu0 %v3388_v42  ;;  %v3407_v63 = vld [vmem:[%s4045_s1 + $0xe8] sm:$0xff]   ;;  %v3409_v2 = vld [vmem:[%s4045_s1 + $0xe0] sm:$0xff]   ;;  %v3410_v8 = vld [vmem:[%s4045_s1 + $0x98] sm:$0xff]  }
  0x38   : > { %3137 = vmatprep.subr.bf16.mxu1 %v3389_v43  ;;  %v893_v4 = vld [vmem:[%s3696_s6] sm:$0xf]  ;;  %v895_v6 = vld [vmem:[%s3696_s6 + $0x8] sm:$0xf]  ;;  %v3422_v15 = vld [vmem:[%s3696_s6 + $0x90] ss:$8 sps:$4 sm:$0xff]  }
  0x39   : > { %v913_v9 = vshrl.u32 %v893_v4, 16  ;;  %v916_v10 = vshll.u32 %v893_v4, 16  ;;  %v927_v12 = vshrl.u32 %v895_v6, 16  ;;  %v930_v13 = vshll.u32 %v895_v6, 16  ;;  %v3411_v16 = vld [vmem:[%s4045_s1 + $0xd8] sm:$0xff]   ;;  %vm3762_vm2 = vmor %vm909_vm0, %vm910_vm1  ;;  %v3417_v40 = vld [vmem:[%s4045_s1 + $0xd0] sm:$0xff]  }
  0x3a   : > { %3114 = vmatpush3.bf16.msra.mxu0 %v3388_v42  ;;  %v897_v20 = vld [vmem:[%s3696_s6 + $0x10] sm:$0xf]  ;;  %v924_v21 = vrot.slane %v922_v11, 5  ;;  %v898_v23 = vld [vmem:[%s3696_s6 + $0x14] sm:$0x1]  ;;  %v938_v33 = vrot.slane %v936_v14, 5 }
  0x3b   : > { %3138 = vmatpush3.bf16.msra.mxu1 %v3389_v43  ;;  %3115 = vmatprep.subr.bf16.mxu0 %v3390_v44  ;;  %v915_v17 = vrot.slane %v913_v9, 4  ;;  %v918_v18 = vrot.slane %v916_v10, 5  ;;  %v929_v19 = vrot.slane %v927_v12, 4  ;;  %v932_v22 = vrot.slane %v930_v13, 5  ;;  %v899_v24 = vld [vmem:[%s3696_s6 + $0x18] sm:$0xf] }
  0x3c   : > { %3139 = vmatprep.subr.bf16.mxu1 %v3391_v45  ;;  %v900_v26 = vld [vmem:[%s3696_s6 + $0x1c] sm:$0x1]  ;;  %v941_v27 = vshrl.u32 %v897_v20, 16  ;;  %v944_v28 = vshll.u32 %v897_v20, 16  ;;  %v950_v29 = vshll.u32 %v898_v23, 16  ;;  %v955_v34 = vshrl.u32 %v899_v24, 16 }
  0x3d   : > { %v919_v25 = vor.u32 %v918_v18, %v915_v17  ;;  %v933_v32 = vor.u32 %v932_v22, %v929_v19  ;;  %v958_v35 = vshll.u32 %v899_v24, 16  ;;  %v964_v39 = vshll.u32 %v900_v26, 16  ;;  %v907_v12 = vld [vmem:[%s3696_s6 + $0x38] sm:$0xf] }
  0x3e   : > { %3116 = vmatpush3.bf16.msra.mxu0 %v3390_v44  ;;  %v943_v37 = vrot.slane %v941_v27, 4  ;;  %v946_v38 = vrot.slane %v944_v28, 5  ;;  %v3769_v42 = vrot.slane %v950_v29, 5  ;;  %v957_v43 = vrot.slane %v955_v34, 4  ;;  %v3424_v23 = vld [vmem:[%s4045_s1 + $0x138] sm:$0xff]  }
  0x3f   : > { %3140 = vmatpush3.bf16.msra.mxu1 %v3391_v45  ;;  %3117 = vmatprep.subr.bf16.mxu0 %v3392_v46  ;;  %v920_v36 = vrot.slane %v919_v25, 4  ;;  %v934_v41 = vrot.slane %v933_v32, 4  ;;  %v960_v44 = vrot.slane %v958_v35, 5  ;;  %v3418_v45 = vld [vmem:[%s4045_s1 + $0x88] sm:$0xff]   ;;  %v1014_v22 = vshll.u32 %v907_v12, 16  ;;  %v3425_v27 = vld [vmem:[%s4045_s1 + $0x178] sm:$0xff]  }
  0x40   : > { %3141 = vmatprep.subr.bf16.mxu1 %v3393_v47 }
  0x41   : > { %v939_v48 = vsel %vm3762_vm2, %v934_v41, %v938_v33  ;;  %v961_v49 = vor.u32 %v960_v44, %v957_v43  ;;  %v3423_v33 = vld [vmem:[%s3696_s6 + $0xa0] ss:$8 sps:$4 sm:$0xff]   ;;  %v3427_v43 = vld [vmem:[%s4045_s1 + $0x170] sm:$0xff]  }
  0x42   : > { %3118 = vmatpush3.bf16.msra.mxu0 %v3392_v46  ;;  %v925_v46 = vsel %vm3762_vm2, %v920_v36, %v924_v21  ;;  %v1011_v21 = vshrl.u32 %v907_v12, 16  ;;  %v2801_v12 = vld [vmem:[%s3696_s6 + $0xa4] sm:$0x1] }
  0x43   : > { %3142 = vmatpush3.bf16.msra.mxu1 %v3393_v47  ;;  %3119 = vmatprep.subr.bf16.mxu0 %v3394_v50  ;;  %v947_v47 = vor.u32 %v946_v38, %v943_v37 }
  0x44   : > { %3143 = vmatprep.subr.bf16.mxu1 %v3395_v51  ;;  %v1013_v29 = vrot.slane %v1011_v21, 4 }
  0x46   : > { %3120 = vmatpush3.bf16.msra.mxu0 %v3394_v50  ;;  %v2712_v50 = vcombine.low %v925_v46, %v939_v48  ;;  %v3428_v46 = vld [vmem:[%s4045_s1 + $0x128] sm:$0xff]  }
  0x47   : > { %3144 = vmatpush3.bf16.msra.mxu1 %v3395_v51  ;;  %3121 = vmatprep.subr.bf16.mxu0 %v3396_v52  ;;  %v948_v51 = vrot.slane %v947_v47, 4 }
  0x48   : > { %3145 = vmatprep.subr.bf16.mxu1 %v3397_v53 }
  0x4a   : > { %3122 = vmatpush3.bf16.msra.mxu0 %v3396_v52  ;;  %v966_v52 = vrot.slane %v964_v39, 5 }
  0x4b   : > { %3146 = vmatpush3.bf16.msra.mxu1 %v3397_v53  ;;  %3155 = vmatprep.subr.bf16.mxu0 %v3402_v55  ;;  %v3419_v53 = vld [vmem:[%s4045_s1 + $0xc8] sm:$0xff]  }
  0x4c   : > { %3179 = vmatprep.subr.bf16.mxu1 %v3403_v56 }
  0x4d   : > { %3124 = vmatmul.mubr.bf16.vlgmr.msra.gmra.mxu0 %v3400_v54  ;;  %v962_v54 = vrot.slane %v961_v49, 4  ;;  %v3429_v49 = vld [vmem:[%s4045_s1 + $0x168] sm:$0xff]  }
  0x4e   : > { %3148 = vmatmul.mubr.bf16.vlgmr.msra.gmra.mxu1 %v3401_v57  ;;  %3156 = vmatpush3.bf16.msra.mxu0 %v3402_v55  ;;  %v901_v55 = vld [vmem:[%s3696_s6 + $0x20] sm:$0xf]  ;;  %v903_v57 = vld [vmem:[%s3696_s6 + $0x28] sm:$0xf] }
  0x4f   : > { %3180 = vmatpush3.bf16.msra.mxu1 %v3403_v56  ;;  %3157 = vmatprep.subr.bf16.mxu0 %v3404_v58  ;;  %v902_v56 = vld [vmem:[%s3696_s6 + $0x24] sm:$0x1]  ;;  %v967_v4 = vsel %vm3762_vm2, %v962_v54, %v966_v52  ;;  %v3434_v54 = vld [vmem:[%s4045_s1 + $0x118] sm:$0xff]  }
  0x50   : > { %3181 = vmatprep.subr.bf16.mxu1 %v3405_v59  ;;  %3127 = vmatprep.mubr.bf16.mxu0 %v3412_v60  ;;  %v972_v60 = vshll.u32 %v901_v55, 16  ;;  %v3432_v52 = vld [vmem:[%s4045_s1 + $0x120] sm:$0xff]  }
  0x51   : > { %3151 = vmatprep.mubr.bf16.mxu1 %v3413_v61  ;;  %v3420_v61 = vld [vmem:[%s4045_s1 + $0x80] sm:$0xff]  }
  0x52   : > { %3158 = vmatpush3.bf16.msra.mxu0 %v3404_v58  ;;  %v904_v58 = vld [vmem:[%s3696_s6 + $0x2c] sm:$0x1]  ;;  %v974_v6 = vrot.slane %v972_v60, 5 }
  0x53   : > { %3182 = vmatpush3.bf16.msra.mxu1 %v3405_v59  ;;  %3159 = vmatprep.subr.bf16.mxu0 %v3406_v62  ;;  %v969_v59 = vshrl.u32 %v901_v55, 16  ;;  %v992_v7 = vshll.u32 %v904_v58, 16  ;;  %v3442_v55 = vld [vmem:[%s3696_s6 + $0xd8] ss:$8 sps:$4 sm:$0xff]  }
  0x54   : > { %3183 = vmatprep.subr.bf16.mxu1 %v3407_v63  ;;  %v2798_v58 = vld [vmem:[%s3696_s6 + $0x98] sm:$0xf] }
  0x55   : > { %3128 = vmatmul.mubr.bf16.gmra.mxu0 %v3414_v1  ;;  %v986_v1 = vshll.u32 %v903_v57, 16  ;;  %v971_v5 = vrot.slane %v969_v59, 4  ;;  %v2799_v59 = vld [vmem:[%s3696_s6 + $0x9c] sm:$0x1] }
  0x56   : > { %3160 = vmatpush3.bf16.msra.mxu0 %v3406_v62  ;;  %3152 = vmatmul.mubr.bf16.gmra.mxu1 %v3415_v3  ;;  %v953_v62 = vsel %vm3762_vm2, %v948_v51, %v3769_v42  ;;  %v3421_v3 = vld [vmem:[%s4045_s1 + $0xc0] sm:$0xff]   ;;  %v3430_v42 = vld [vmem:[%s3696_s6 + $0xb0] ss:$8 sps:$4 sm:$0xff]  }
  0x57   : > { %3184 = vmatpush3.bf16.msra.mxu1 %v3407_v63  ;;  %3161 = vmatprep.subr.bf16.mxu0 %v3408_v0  ;;  %v978_v63 = vshll.u32 %v902_v56, 16  ;;  %v988_v11 = vrot.slane %v986_v1, 5  ;;  %v975_v14 = vor.u32 %v974_v6, %v971_v5  ;;  %v2713_v32 = vcombine.low %v953_v62, %v967_v4  ;;  %v3431_v51 = vld [vmem:[%s3696_s6 + $0xc0] ss:$8 sps:$4 sm:$0xff]   ;;  %v2796_v56 = vld [vmem:[%s3696_s6 + $0x90] sm:$0xf] }
  0x58   : > { %3185 = vmatprep.subr.bf16.mxu1 %v3409_v2  ;;  %3195 = vmatprep.mubr.bf16.mxu1 %v3422_v15  ;;  %v994_v15 = vrot.slane %v992_v7, 5  ;;  %v1541_v60 = vshrl.u32 %v2796_v56, 16  ;;  %v1564_v1 = vshll.u32 %v2799_v59, 16  ;;  %v3436_v5 = vld [vmem:[%s4045_s1 + $0x110] sm:$0xff]   ;;  %v2808_v59 = vld [vmem:[%s3696_s6 + $0xc0] sm:$0xf] }
  0x59   : > { %3171 = vmatprep.mubr.bf16.mxu0 %v2712_v50  ;;  %v980_v9 = vrot.slane %v978_v63, 5  ;;  %v976_v24 = vrot.slane %v975_v14, 4  ;;  %v1555_v63 = vshrl.u32 %v2798_v58, 16  ;;  %v2803_v14 = vld [vmem:[%s3696_s6 + $0xac] sm:$0x1] }
  0x5a   : > { %3162 = vmatpush3.bf16.msra.mxu0 %v3408_v0  ;;  %v983_v0 = vshrl.u32 %v903_v57, 16  ;;  %v2797_v57 = vld [vmem:[%s3696_s6 + $0x94] sm:$0x1] }
  0x5b   : > { %3186 = vmatpush3.bf16.msra.mxu1 %v3409_v2  ;;  %3163 = vmatprep.subr.bf16.mxu0 %v3410_v8  ;;  %v905_v2 = vld [vmem:[%s3696_s6 + $0x30] sm:$0xf]  ;;  %v981_v34 = vsel %vm3762_vm2, %v976_v24, %v980_v9  ;;  %v1550_v62 = vshll.u32 %v2797_v57, 16  ;;  %v1557_v7 = vrot.slane %v1555_v63, 4  ;;  %v1566_v9 = vrot.slane %v1564_v1, 5 }
  0x5c   : > { %3187 = vmatprep.subr.bf16.mxu1 %v3411_v16  ;;  %v985_v10 = vrot.slane %v983_v0, 4  ;;  %v997_v13 = vshrl.u32 %v905_v2, 16  ;;  %v1000_v17 = vshll.u32 %v905_v2, 16  ;;  %v1558_v0 = vshll.u32 %v2798_v58, 16  ;;  %v3435_v2 = vld [vmem:[%s4045_s1 + $0x158] sm:$0xff]  }
  0x5d   : > { %v1552_v6 = vrot.slane %v1550_v62, 5  ;;  %v2810_v1 = vld [vmem:[%s3696_s6 + $0xc8] sm:$0xf] }
  0x5e   : > { %3164 = vmatpush3.bf16.msra.mxu0 %v3410_v8  ;;  %v906_v8 = vld [vmem:[%s3696_s6 + $0x34] sm:$0x1]  ;;  %v989_v19 = vor.u32 %v988_v11, %v985_v10  ;;  %v999_v20 = vrot.slane %v997_v13, 4  ;;  %v1002_v25 = vrot.slane %v1000_v17, 5  ;;  %v2800_v10 = vld [vmem:[%s3696_s6 + $0xa0] sm:$0xf] }
  0x5f   : > { %3188 = vmatpush3.bf16.msra.mxu1 %v3411_v16  ;;  %3165 = vmatprep.subr.bf16.mxu0 %v3416_v30  ;;  %v908_v16 = vld [vmem:[%s3696_s6 + $0x3c] sm:$0x1]  ;;  %v1006_v18 = vshll.u32 %v906_v8, 16  ;;  %v1560_v8 = vrot.slane %v1558_v0, 5  ;;  %v2802_v13 = vld [vmem:[%s3696_s6 + $0xa8] sm:$0xf] }
  0x60   : > { %3189 = vmatprep.subr.bf16.mxu1 %v3417_v40  ;;  %v1020_v26 = vshll.u32 %v908_v16, 16  ;;  %v990_v28 = vrot.slane %v989_v19, 4  ;;  %v1003_v35 = vor.u32 %v1002_v25, %v999_v20  ;;  %v1569_v17 = vshrl.u32 %v2800_v10, 16 }
  0x61   : > { %v1008_v37 = vrot.slane %v1006_v18, 5  ;;  %v1561_v16 = vor.u32 %v1560_v8, %v1557_v7  ;;  %v1572_v18 = vshll.u32 %v2800_v10, 16  ;;  %v1578_v19 = vshll.u32 %v2801_v12, 16  ;;  %v3448_v7 = vld [vmem:[%s3696_s6 + $0xf8] ss:$8 sps:$4 sm:$0xff]   ;;  %v3446_v12 = vld [vmem:[%s4045_s1 + $0x1b0] sm:$0xff]  }
  0x62   : > { %3166 = vmatpush3.bf16.msra.mxu0 %v3416_v30  ;;  %v1016_v30 = vrot.slane %v1014_v22, 5  ;;  %v995_v36 = vsel %vm3762_vm2, %v990_v28, %v994_v15  ;;  %v1022_v39 = vrot.slane %v1020_v26, 5  ;;  %v1004_v41 = vrot.slane %v1003_v35, 4  ;;  %v3437_v15 = vld [vmem:[%s4045_s1 + $0x150] sm:$0xff]  }
  0x63   : > { %3190 = vmatpush3.bf16.msra.mxu1 %v3417_v40  ;;  %3167 = vmatprep.subr.bf16.mxu0 %v3418_v45  ;;  %v3426_v40 = vld [vmem:[%s4045_s1 + $0x130] sm:$0xff]   ;;  %v2714_v44 = vcombine.low %v981_v34, %v995_v36  ;;  %v1583_v21 = vshrl.u32 %v2802_v13, 16  ;;  %v1586_v22 = vshll.u32 %v2802_v13, 16  ;;  %v1562_v24 = vrot.slane %v1561_v16, 4 }
  0x64   : > { %3191 = vmatprep.subr.bf16.mxu1 %v3419_v53  ;;  %v1017_v38 = vor.u32 %v1016_v30, %v1013_v29  ;;  %v1009_v47 = vsel %vm3762_vm2, %v1004_v41, %v1008_v37  ;;  %v1571_v25 = vrot.slane %v1569_v17, 4  ;;  %v1574_v26 = vrot.slane %v1572_v18, 5  ;;  %v3447_v17 = vld [vmem:[%s4045_s1 + $0x1f0] sm:$0xff]  }
  0x65   : > { %v1585_v29 = vrot.slane %v1583_v21, 4  ;;  %v1588_v30 = vrot.slane %v1586_v22, 5  ;;  %v1580_v36 = vrot.slane %v1578_v19, 5  ;;  %v1639_v10 = vshrl.u32 %v2810_v1, 16 }
  0x66   : > { %3168 = vmatpush3.bf16.msra.mxu0 %v3418_v45  ;;  %v1018_v45 = vrot.slane %v1017_v38, 4  ;;  %v1575_v34 = vor.u32 %v1574_v26, %v1571_v25 }
  0x67   : > { %3192 = vmatpush3.bf16.msra.mxu1 %v3419_v53  ;;  %3169 = vmatprep.subr.bf16.mxu0 %v3420_v61  ;;  %v3433_v53 = vld [vmem:[%s4045_s1 + $0x160] sm:$0xff]   ;;  %v1589_v37 = vor.u32 %v1588_v30, %v1585_v29  ;;  %v1641_v19 = vrot.slane %v1639_v10, 4  ;;  %v3451_v30 = vld [vmem:[%s4045_s1 + $0x1e8] sm:$0xff]   ;;  %v3467_v10 = vld [vmem:[%s4045_s1 + $0x230] sm:$0xff]  }
  0x68   : > { %3193 = vmatprep.subr.bf16.mxu1 %v3421_v3  ;;  %v1023_v48 = vsel %vm3762_vm2, %v1018_v45, %v1022_v39  ;;  %v1576_v39 = vrot.slane %v1575_v34, 4  ;;  %v3444_v45 = vld [vmem:[%s4045_s1 + $0x1b8] sm:$0xff]   ;;  %v3449_v34 = vld [vmem:[%s3696_s6 + $0x108] ss:$8 sps:$4 sm:$0xff]  }
  0x69   : > { %v2715_v50 = vcombine.low %v1009_v47, %v1023_v48  ;;  %v1590_v41 = vrot.slane %v1589_v37, 4  ;;  %v2805_v47 = vld [vmem:[%s3696_s6 + $0xb4] sm:$0x1]  ;;  %v2806_v48 = vld [vmem:[%s3696_s6 + $0xb8] sm:$0xf] }
  0x6a   : > { %3170 = vmatpush3.bf16.msra.mxu0 %v3420_v61  ;;  %v1544_v61 = vshll.u32 %v2796_v56, 16  ;;  %v1614_v57 = vshll.u32 %v2806_v48, 16 }
  0x6b   : > { %3194 = vmatpush3.bf16.msra.mxu1 %v3421_v3  ;;  %3203 = vmatprep.subr.bf16.mxu0 %v3424_v23  ;;  %v1543_v3 = vrot.slane %v1541_v60, 4  ;;  %v2809_v60 = vld [vmem:[%s3696_s6 + $0xc4] sm:$0x1] }
  0x6c   : > { %3227 = vmatprep.subr.bf16.mxu1 %v3425_v27  ;;  %v1546_v4 = vrot.slane %v1544_v61, 5 }
  0x6d   : > { %3172 = vmatmul.mubr.bf16.vlgmr.msra.gmra.mxu0 %v2713_v32  ;;  %v3439_v32 = vld [vmem:[%s4045_s1 + $0x148] sm:$0xff]  }
  0x6e   : > { %3196 = vmatmul.mubr.bf16.vlgmr.msra.gmra.mxu1 %v3423_v33  ;;  %3204 = vmatpush3.bf16.msra.mxu0 %v3424_v23  ;;  %v1547_v11 = vor.u32 %v1546_v4, %v1543_v3  ;;  %v1592_v23 = vshll.u32 %v2803_v14, 16  ;;  %v1567_v33 = vsel %vm3762_vm2, %v1562_v24, %v1566_v9  ;;  %v2811_v4 = vld [vmem:[%s3696_s6 + $0xcc] sm:$0x1]  ;;  %v1634_v9 = vshll.u32 %v2809_v60, 16  ;;  %v2920_v60 = vld [vmem:[%s3696_s6 + $0x28] sm:$0xf] }
  0x6f   : > { %3228 = vmatpush3.bf16.msra.mxu1 %v3425_v27  ;;  %3205 = vmatprep.subr.bf16.mxu0 %v3426_v40  ;;  %v3438_v27 = vld [vmem:[%s4045_s1 + $0x108] sm:$0xff]   ;;  %v1648_v16 = vshll.u32 %v2811_v4, 16  ;;  %v2923_v4 = vld [vmem:[%s3696_s6 + $0x34] sm:$0x1] }
  0x70   : > { %3229 = vmatprep.subr.bf16.mxu1 %v3427_v43  ;;  %3175 = vmatprep.mubr.bf16.mxu0 %v2714_v44  ;;  %v1548_v20 = vrot.slane %v1547_v11, 4  ;;  %v1594_v38 = vrot.slane %v1592_v23, 5  ;;  %v1642_v11 = vshll.u32 %v2810_v1, 16  ;;  %v1636_v23 = vrot.slane %v1634_v9, 5 }
  0x71   : > { %3199 = vmatprep.mubr.bf16.mxu1 %v3430_v42  ;;  %v3441_v42 = vld [vmem:[%s4045_s1 + $0x140] sm:$0xff]   ;;  %v1650_v26 = vrot.slane %v1648_v16, 5  ;;  %v2229_v9 = vshll.u32 %v2920_v60, 16 }
  0x72   : > { %3206 = vmatpush3.bf16.msra.mxu0 %v3426_v40  ;;  %v1553_v28 = vsel %vm3762_vm2, %v1548_v20, %v1552_v6  ;;  %v3440_v40 = vld [vmem:[%s4045_s1 + $0x100] sm:$0xff]   ;;  %v1595_v44 = vsel %vm3762_vm2, %v1590_v41, %v1594_v38  ;;  %v1628_v6 = vshll.u32 %v2808_v59, 16  ;;  %v1644_v20 = vrot.slane %v1642_v11, 5  ;;  %v3462_v41 = vld [vmem:[%s3696_s6 + $0x8] ss:$8 sps:$4 sm:$0xff]  }
  0x73   : > { %3230 = vmatpush3.bf16.msra.mxu1 %v3427_v43  ;;  %3207 = vmatprep.subr.bf16.mxu0 %v3428_v46  ;;  %v2828_v35 = vcombine.low %v1553_v28, %v1567_v33  ;;  %v1581_v43 = vsel %vm3762_vm2, %v1576_v39, %v1580_v36  ;;  %v3452_v38 = vld [vmem:[%s4045_s1 + $0x1a0] sm:$0xff]  }
  0x74   : > { %3231 = vmatprep.subr.bf16.mxu1 %v3429_v49  ;;  %v2829_v56 = vcombine.low %v1581_v43, %v1595_v44  ;;  %v1645_v25 = vor.u32 %v1644_v20, %v1641_v19  ;;  %v3453_v39 = vld [vmem:[%s4045_s1 + $0x1e0] sm:$0xff]   ;;  %v3455_v43 = vld [vmem:[%s4045_s1 + $0x1d8] sm:$0xff]   ;;  %v3456_v44 = vld [vmem:[%s4045_s1 + $0x190] sm:$0xff]   ;;  %v2249_v19 = vshll.u32 %v2923_v4, 16 }
  0x75   : > { %3176 = vmatmul.mubr.bf16.gmra.mxu0 %v2715_v50  ;;  %v2807_v50 = vld [vmem:[%s3696_s6 + $0xbc] sm:$0x1]  ;;  %v3471_v20 = vld [vmem:[%s3696_s6 + $0x70] ss:$8 sps:$4 sm:$0xff]   ;;  %v2927_v4 = vld [vmem:[%s3696_s6 + $0x44] sm:$0x1] }
  0x76   : > { %3208 = vmatpush3.bf16.msra.mxu0 %v3428_v46  ;;  %3200 = vmatmul.mubr.bf16.gmra.mxu1 %v3431_v51  ;;  %v2804_v46 = vld [vmem:[%s3696_s6 + $0xb0] sm:$0xf]  ;;  %v1620_v58 = vshll.u32 %v2807_v50, 16  ;;  %v1646_v33 = vrot.slane %v1645_v25, 4  ;;  %v3466_v50 = vld [vmem:[%s4045_s1 + $0x238] sm:$0xff]  }
  0x77   : > { %3232 = vmatpush3.bf16.msra.mxu1 %v3429_v49  ;;  %3209 = vmatprep.subr.bf16.mxu0 %v3432_v52  ;;  %v3445_v49 = vld [vmem:[%s4045_s1 + $0x1f8] sm:$0xff]   ;;  %v1597_v51 = vshrl.u32 %v2804_v46, 16 }
  0x78   : > { %3233 = vmatprep.subr.bf16.mxu1 %v3433_v53  ;;  %3219 = vmatprep.mubr.bf16.mxu0 %v3442_v55  ;;  %v3443_v55 = vld [vmem:[%s3696_s6 + $0xe8] ss:$8 sps:$4 sm:$0xff]   ;;  %v1622_v3 = vrot.slane %v1620_v58, 5  ;;  %v1651_v36 = vsel %vm3762_vm2, %v1646_v33, %v1650_v26  ;;  %v3469_v33 = vld [vmem:[%s3696_s6 + $0x38] ss:$8 sps:$4 sm:$0xff]  }
  0x79   : > { %3243 = vmatprep.mubr.bf16.mxu1 %v2828_v35  ;;  %v1599_v61 = vrot.slane %v1597_v51, 4  ;;  %v2912_v51 = vld [vmem:[%s3696_s6 + $0x8] sm:$0xf] }
  0x7a   : > { %3210 = vmatpush3.bf16.msra.mxu0 %v3432_v52  ;;  %v1600_v52 = vshll.u32 %v2804_v46, 16  ;;  %v3458_v46 = vld [vmem:[%s4045_s1 + $0x188] sm:$0xff]  }
  0x7b   : > { %3234 = vmatpush3.bf16.msra.mxu1 %v3433_v53  ;;  %3211 = vmatprep.subr.bf16.mxu0 %v3434_v54  ;;  %v1606_v53 = vshll.u32 %v2805_v47, 16  ;;  %v3459_v47 = vld [vmem:[%s4045_s1 + $0x1c8] sm:$0xff]  }
  0x7c   : > { %3235 = vmatprep.subr.bf16.mxu1 %v3435_v2  ;;  %v1602_v62 = vrot.slane %v1600_v52, 5  ;;  %v2913_v52 = vld [vmem:[%s3696_s6 + $0xc] sm:$0x1] }
  0x7d   : > { %v1608_v63 = vrot.slane %v1606_v53, 5  ;;  %v2914_v53 = vld [vmem:[%s3696_s6 + $0x10] sm:$0xf]  ;;  %v2179_v58 = vshll.u32 %v2913_v52, 16 }
  0x7e   : > { %3212 = vmatpush3.bf16.msra.mxu0 %v3434_v54  ;;  %v1611_v54 = vshrl.u32 %v2806_v48, 16  ;;  %v1603_v8 = vor.u32 %v1602_v62, %v1599_v61  ;;  %v3460_v48 = vld [vmem:[%s4045_s1 + $0x180] sm:$0xff]   ;;  %v2187_v61 = vshll.u32 %v2914_v53, 16  ;;  %v2921_v62 = vld [vmem:[%s3696_s6 + $0x2c] sm:$0x1] }
  0x7f   : > { %3236 = vmatpush3.bf16.msra.mxu1 %v3435_v2  ;;  %3213 = vmatprep.subr.bf16.mxu0 %v3436_v5  ;;  %v1616_v2 = vrot.slane %v1614_v57, 5  ;;  %v2173_v57 = vshll.u32 %v2912_v51, 16 }
  0x80   : > { %3237 = vmatprep.subr.bf16.mxu1 %v3437_v15  ;;  %v1613_v0 = vrot.slane %v1611_v54, 4  ;;  %v1604_v18 = vrot.slane %v1603_v8, 4  ;;  %v2915_v54 = vld [vmem:[%s3696_s6 + $0x14] sm:$0x1]  ;;  %v2226_v8 = vshrl.u32 %v2920_v60, 16 }
  0x81   : > { %v2175_v1 = vrot.slane %v2173_v57, 5  ;;  %v2917_v57 = vld [vmem:[%s3696_s6 + $0x1c] sm:$0x1] }
  0x82   : > { %3214 = vmatpush3.bf16.msra.mxu0 %v3436_v5  ;;  %v1625_v5 = vshrl.u32 %v2808_v59, 16  ;;  %v1617_v13 = vor.u32 %v1616_v2, %v1613_v0  ;;  %v1609_v24 = vsel %vm3762_vm2, %v1604_v18, %v1608_v63  ;;  %v2184_v59 = vshrl.u32 %v2914_v53, 16  ;;  %v2922_v63 = vld [vmem:[%s3696_s6 + $0x30] sm:$0xf] }
  0x83   : > { %3238 = vmatpush3.bf16.msra.mxu1 %v3437_v15  ;;  %3215 = vmatprep.subr.bf16.mxu0 %v3438_v27  ;;  %v1630_v15 = vrot.slane %v1628_v6, 5  ;;  %v2181_v6 = vrot.slane %v2179_v58, 5  ;;  %v2231_v18 = vrot.slane %v2229_v9, 5  ;;  %v3476_v9 = vld [vmem:[%s4045_s1 + $0x208] sm:$0xff]  }
  0x84   : > { %3239 = vmatprep.subr.bf16.mxu1 %v3439_v32  ;;  %v1627_v14 = vrot.slane %v1625_v5, 4  ;;  %v1618_v21 = vrot.slane %v1617_v13, 4  ;;  %v2186_v2 = vrot.slane %v2184_v59, 4  ;;  %v3465_v5 = vld [vmem:[%s3696_s6 + $0x60] ss:$8 sps:$4 sm:$0xff]   ;;  %v2240_v13 = vshrl.u32 %v2922_v63, 16 }
  0x86   : > { %3216 = vmatpush3.bf16.msra.mxu0 %v3438_v27  ;;  %v1631_v22 = vor.u32 %v1630_v15, %v1627_v14  ;;  %v3450_v27 = vld [vmem:[%s4045_s1 + $0x1a8] sm:$0xff]   ;;  %v1623_v28 = vsel %vm3762_vm2, %v1618_v21, %v1622_v3  ;;  %v2193_v3 = vshll.u32 %v2915_v54, 16  ;;  %v2243_v14 = vshll.u32 %v2922_v63, 16 }
  0x87   : > { %3240 = vmatpush3.bf16.msra.mxu1 %v3439_v32  ;;  %3217 = vmatprep.subr.bf16.mxu0 %v3440_v40  ;;  %v2830_v32 = vcombine.low %v1609_v24, %v1623_v28  ;;  %v3468_v15 = vld [vmem:[%s3696_s6 + $0x28] ss:$8 sps:$4 sm:$0xff]  }
  0x88   : > { %3241 = vmatprep.subr.bf16.mxu1 %v3441_v42  ;;  %v1632_v29 = vrot.slane %v1631_v22, 4  ;;  %v2195_v22 = vrot.slane %v2193_v3, 5  ;;  %v2245_v24 = vrot.slane %v2243_v14, 5  ;;  %v3470_v28 = vld [vmem:[%s4045_s1 + $0x228] sm:$0xff]   ;;  %v2925_v3 = vld [vmem:[%s3696_s6 + $0x3c] sm:$0x1] }
  0x8a   : > { %3218 = vmatpush3.bf16.msra.mxu0 %v3440_v40  ;;  %v1637_v35 = vsel %vm3762_vm2, %v1632_v29, %v1636_v23  ;;  %v3454_v40 = vld [vmem:[%s4045_s1 + $0x198] sm:$0xff]   ;;  %v2242_v23 = vrot.slane %v2240_v13, 4  ;;  %v2277_v13 = vshll.u32 %v2927_v4, 16 }
  0x8b   : > { %3242 = vmatpush3.bf16.msra.mxu1 %v3441_v42  ;;  %3251 = vmatprep.subr.bf16.mxu0 %v3444_v45  ;;  %v2831_v37 = vcombine.low %v1637_v35, %v1651_v36  ;;  %v3463_v42 = vld [vmem:[%s3696_s6 + $0x50] ss:$8 sps:$4 sm:$0xff]  }
  0x8c   : > { %3275 = vmatprep.subr.bf16.mxu1 %v3445_v49  ;;  %v2246_v29 = vor.u32 %v2245_v24, %v2242_v23 }
  0x8d   : > { %3220 = vmatmul.mubr.bf16.vlgmr.msra.gmra.mxu0 %v3443_v55  ;;  %v3464_v55 = vld [vmem:[%s3696_s6 + $0x18] ss:$8 sps:$4 sm:$0xff]  }
  0x8e   : > { %3244 = vmatmul.mubr.bf16.vlgmr.msra.gmra.mxu1 %v2829_v56  ;;  %3252 = vmatpush3.bf16.msra.mxu0 %v3444_v45  ;;  %v3457_v45 = vld [vmem:[%s4045_s1 + $0x1d0] sm:$0xff]   ;;  %v2170_v56 = vshrl.u32 %v2912_v51, 16  ;;  %v2247_v36 = vrot.slane %v2246_v29, 4  ;;  %v3474_v51 = vld [vmem:[%s4045_s1 + $0x218] sm:$0xff]  }
  0x8f   : > { %3276 = vmatpush3.bf16.msra.mxu1 %v3445_v49  ;;  %3253 = vmatprep.subr.bf16.mxu0 %v3446_v12  ;;  %v3461_v49 = vld [vmem:[%s4045_s1 + $0x1c0] sm:$0xff]  }
  0x90   : > { %3277 = vmatprep.subr.bf16.mxu1 %v3447_v17  ;;  %3223 = vmatprep.mubr.bf16.mxu0 %v3448_v7  ;;  %v2172_v0 = vrot.slane %v2170_v56, 4  ;;  %v2189_v7 = vrot.slane %v2187_v61, 5  ;;  %v3475_v56 = vld [vmem:[%s4045_s1 + $0x210] sm:$0xff]  }
  0x91   : > { %3247 = vmatprep.mubr.bf16.mxu1 %v2830_v32 }
  0x92   : > { %3254 = vmatpush3.bf16.msra.mxu0 %v3446_v12  ;;  %v2176_v11 = vor.u32 %v2175_v1, %v2172_v0  ;;  %v2235_v12 = vshll.u32 %v2921_v62, 16  ;;  %v2190_v16 = vor.u32 %v2189_v7, %v2186_v2  ;;  %v2919_v62 = vld [vmem:[%s3696_s6 + $0x24] sm:$0x1] }
  0x93   : > { %3278 = vmatpush3.bf16.msra.mxu1 %v3447_v17  ;;  %3255 = vmatprep.subr.bf16.mxu0 %v3450_v27  ;;  %v2228_v17 = vrot.slane %v2226_v8, 4  ;;  %v2221_v8 = vshll.u32 %v2919_v62, 16 }
  0x94   : > { %3279 = vmatprep.subr.bf16.mxu1 %v3451_v30  ;;  %v2177_v21 = vrot.slane %v2176_v11, 4  ;;  %v2191_v25 = vrot.slane %v2190_v16, 4  ;;  %v2263_v11 = vshll.u32 %v2925_v3, 16 }
  0x95   : > { %3224 = vmatmul.mubr.bf16.gmra.mxu0 %v3449_v34  ;;  %v2232_v26 = vor.u32 %v2231_v18, %v2228_v17  ;;  %v2223_v17 = vrot.slane %v2221_v8, 5  ;;  %v3477_v18 = vld [vmem:[%s4045_s1 + $0x200] sm:$0xff]  }
  0x96   : > { %3256 = vmatpush3.bf16.msra.mxu0 %v3450_v27  ;;  %3248 = vmatmul.mubr.bf16.gmra.mxu1 %v2831_v37  ;;  %v2237_v27 = vrot.slane %v2235_v12, 5  ;;  %v2182_v34 = vsel %vm3762_vm2, %v2177_v21, %v2181_v6  ;;  %v2196_v35 = vsel %vm3762_vm2, %v2191_v25, %v2195_v22  ;;  %v3472_v37 = vld [vmem:[%s3696_s6 + $0x80] ss:$8 sps:$4 sm:$0xff]   ;;  %v2207_v6 = vshll.u32 %v2917_v57, 16 }
  0x97   : > { %3280 = vmatpush3.bf16.msra.mxu1 %v3451_v30  ;;  %3257 = vmatprep.subr.bf16.mxu0 %v3452_v38  ;;  %v2251_v30 = vrot.slane %v2249_v19, 5  ;;  %v2233_v32 = vrot.slane %v2232_v26, 4  ;;  %v2279_v22 = vrot.slane %v2277_v13, 5 }
  0x98   : > { %3281 = vmatprep.subr.bf16.mxu1 %v3453_v39  ;;  %3267 = vmatprep.mubr.bf16.mxu0 %v3462_v41  ;;  %v2916_v41 = vld [vmem:[%s3696_s6 + $0x18] sm:$0xf] }
  0x99   : > { %3291 = vmatprep.mubr.bf16.mxu1 %v3463_v42  ;;  %v2918_v42 = vld [vmem:[%s3696_s6 + $0x20] sm:$0xf] }
  0x9a   : > { %3258 = vmatpush3.bf16.msra.mxu0 %v3452_v38  ;;  %v2238_v38 = vsel %vm3762_vm2, %v2233_v32, %v2237_v27 }
  0x9b   : > { %3282 = vmatpush3.bf16.msra.mxu1 %v3453_v39  ;;  %3259 = vmatprep.subr.bf16.mxu0 %v3454_v40  ;;  %v3473_v39 = vld [vmem:[%s4045_s1 + $0x220] sm:$0xff]  }
  0x9c   : > { %3283 = vmatprep.subr.bf16.mxu1 %v3455_v43 }
  0x9e   : > { %3260 = vmatpush3.bf16.msra.mxu0 %v3454_v40  ;;  %v2252_v40 = vsel %vm3762_vm2, %v2247_v36, %v2251_v30 }
  0x9f   : > { %3284 = vmatpush3.bf16.msra.mxu1 %v3455_v43  ;;  %3261 = vmatprep.subr.bf16.mxu0 %v3456_v44  ;;  %v2944_v43 = vcombine.low %v2182_v34, %v2196_v35 }
  0xa0   : > { %3285 = vmatprep.subr.bf16.mxu1 %v3457_v45 }
  0xa2   : > { %3262 = vmatpush3.bf16.msra.mxu0 %v3456_v44  ;;  %v2924_v44 = vld [vmem:[%s3696_s6 + $0x38] sm:$0xf] }
  0xa3   : > { %3286 = vmatpush3.bf16.msra.mxu1 %v3457_v45  ;;  %3263 = vmatprep.subr.bf16.mxu0 %v3458_v46  ;;  %v2926_v45 = vld [vmem:[%s3696_s6 + $0x40] sm:$0xf]  ;;  %v2254_v52 = vshrl.u32 %v2924_v44, 16  ;;  %v2257_v53 = vshll.u32 %v2924_v44, 16 }
  0xa4   : > { %3287 = vmatprep.subr.bf16.mxu1 %v3459_v47  ;;  %v2268_v54 = vshrl.u32 %v2926_v45, 16 }
  0xa5   : > { %v2256_v63 = vrot.slane %v2254_v52, 4  ;;  %v2259_v0 = vrot.slane %v2257_v53, 5 }
  0xa6   : > { %3264 = vmatpush3.bf16.msra.mxu0 %v3458_v46  ;;  %v2946_v46 = vcombine.low %v2238_v38, %v2252_v40  ;;  %v2270_v1 = vrot.slane %v2268_v54, 4 }
  0xa7   : > { %3288 = vmatpush3.bf16.msra.mxu1 %v3459_v47  ;;  %3265 = vmatprep.subr.bf16.mxu0 %v3460_v48  ;;  %v2198_v47 = vshrl.u32 %v2916_v41, 16 }
  0xa8   : > { %3289 = vmatprep.subr.bf16.mxu1 %v3461_v49 }
  0xa9   : > { %v2200_v58 = vrot.slane %v2198_v47, 4 }
  0xaa   : > { %3266 = vmatpush3.bf16.msra.mxu0 %v3460_v48  ;;  %v2201_v48 = vshll.u32 %v2916_v41, 16 }
  0xab   : > { %3290 = vmatpush3.bf16.msra.mxu1 %v3461_v49  ;;  %3299 = vmatprep.subr.bf16.mxu0 %v3466_v50  ;;  %v2212_v49 = vshrl.u32 %v2918_v42, 16 }
  0xac   : > { %3323 = vmatprep.subr.bf16.mxu1 %v3466_v50  ;;  %v2203_v59 = vrot.slane %v2201_v48, 5 }
  0xad   : > { %3268 = vmatmul.mubr.bf16.vlgmr.msra.gmra.mxu0 %v3464_v55  ;;  %v2271_v55 = vshll.u32 %v2926_v45, 16  ;;  %v2214_v60 = vrot.slane %v2212_v49, 4 }
  0xae   : > { %3292 = vmatmul.mubr.bf16.vlgmr.msra.gmra.mxu1 %v3465_v5  ;;  %3300 = vmatpush3.bf16.msra.mxu0 %v3466_v50  ;;  %v2204_v5 = vor.u32 %v2203_v59, %v2200_v58 }
  0xaf   : > { %3331 = vmatpush3.bf16.msra.mxu1 %v3466_v50  ;;  %3301 = vmatprep.subr.bf16.mxu0 %v3467_v10  ;;  %v2215_v50 = vshll.u32 %v2918_v42, 16  ;;  %v2273_v2 = vrot.slane %v2271_v55, 5 }
  0xb0   : > { %3324 = vmatprep.subr.bf16.mxu1 %v3467_v10  ;;  %3271 = vmatprep.mubr.bf16.mxu0 %v3468_v15  ;;  %v2205_v14 = vrot.slane %v2204_v5, 4  ;;  %v2209_v15 = vrot.slane %v2207_v6, 5 }
  0xb1   : > { %3295 = vmatprep.mubr.bf16.mxu1 %v3471_v20  ;;  %v2217_v61 = vrot.slane %v2215_v50, 5  ;;  %v2274_v12 = vor.u32 %v2273_v2, %v2270_v1  ;;  %v2265_v20 = vrot.slane %v2263_v11, 5 }
  0xb2   : > { %3302 = vmatpush3.bf16.msra.mxu0 %v3467_v10  ;;  %v2210_v23 = vsel %vm3762_vm2, %v2205_v14, %v2209_v15 }
  0xb3   : > { %3332 = vmatpush3.bf16.msra.mxu1 %v3467_v10  ;;  %3303 = vmatprep.subr.bf16.mxu0 %v3470_v28  ;;  %v2218_v7 = vor.u32 %v2217_v61, %v2214_v60  ;;  %v2260_v10 = vor.u32 %v2259_v0, %v2256_v63  ;;  %v2275_v21 = vrot.slane %v2274_v12, 4 }
  0xb4   : > { %3325 = vmatprep.subr.bf16.mxu1 %v3470_v28 }
  0xb5   : > { %3272 = vmatmul.mubr.bf16.gmra.mxu0 %v3469_v33  ;;  %v2219_v16 = vrot.slane %v2218_v7, 4  ;;  %v2261_v19 = vrot.slane %v2260_v10, 4  ;;  %v2280_v26 = vsel %vm3762_vm2, %v2275_v21, %v2279_v22 }
  0xb6   : > { %3304 = vmatpush3.bf16.msra.mxu0 %v3470_v28  ;;  %3296 = vmatmul.mubr.bf16.gmra.mxu1 %v3472_v37 }
  0xb7   : > { %3333 = vmatpush3.bf16.msra.mxu1 %v3470_v28  ;;  %3305 = vmatprep.subr.bf16.mxu0 %v3473_v39  ;;  %v2224_v24 = vsel %vm3762_vm2, %v2219_v16, %v2223_v17  ;;  %v2266_v25 = vsel %vm3762_vm2, %v2261_v19, %v2265_v20 }
  0xb8   : > { %3326 = vmatprep.subr.bf16.mxu1 %v3473_v39  ;;  %3315 = vmatprep.mubr.bf16.mxu0 %v2944_v43  ;;  %v2945_v27 = vcombine.low %v2210_v23, %v2224_v24  ;;  %v2947_v28 = vcombine.low %v2266_v25, %v2280_v26 }
  0xb9   : > { %3319 = vmatprep.mubr.bf16.mxu1 %v2946_v46 }
  0xba   : > { %3306 = vmatpush3.bf16.msra.mxu0 %v3473_v39 }
  0xbb   : > { %3334 = vmatpush3.bf16.msra.mxu1 %v3473_v39  ;;  %3307 = vmatprep.subr.bf16.mxu0 %v3474_v51 }
  0xbc   : > { %3327 = vmatprep.subr.bf16.mxu1 %v3474_v51 }
  0xbe   : > { %3308 = vmatpush3.bf16.msra.mxu0 %v3474_v51 }
  0xbf   : > { %3335 = vmatpush3.bf16.msra.mxu1 %v3474_v51  ;;  %3309 = vmatprep.subr.bf16.mxu0 %v3475_v56 }
  0xc0   : > { %3328 = vmatprep.subr.bf16.mxu1 %v3475_v56 }
  0xc2   : > { %3310 = vmatpush3.bf16.msra.mxu0 %v3475_v56 }
  0xc3   : > { %3336 = vmatpush3.bf16.msra.mxu1 %v3475_v56  ;;  %3311 = vmatprep.subr.bf16.mxu0 %v3476_v9 }
  0xc4   : > { %3329 = vmatprep.subr.bf16.mxu1 %v3476_v9 }
  0xc6   : > { %3312 = vmatpush3.bf16.msra.mxu0 %v3476_v9 }
  0xc7   : > { %3337 = vmatpush3.bf16.msra.mxu1 %v3476_v9  ;;  %3313 = vmatprep.subr.bf16.mxu0 %v3477_v18 }
  0xc8   : > { %3330 = vmatprep.subr.bf16.mxu1 %v3477_v18 }
  0xca   : > { %3314 = vmatpush3.bf16.msra.mxu0 %v3477_v18 }
  0xcb   : > { %3338 = vmatpush3.bf16.msra.mxu1 %v3477_v18 }
  0xcd   : > { %3316 = vmatmul.mubr.bf16.vlgmr.msra.gmra.mxu0 %v2945_v27 }
  0xce   : > { %3320 = vmatmul.mubr.bf16.vlgmr.msra.gmra.mxu1 %v2947_v28 }
 0x10d   : > { %v3125_v29 = vpop.f32.mrf.mxu0 }
 0x10e   : > { %v3149_v32 = vpop.f32.mrf.mxu1 }
 0x10f   : > { %v725_v30 = vpop.f32.mrf.mxu0  ;;  %v871_v18 = vadd.f32 %v3149_v32, %v3125_v29 }
 0x110   : > { %v862_v34 = vpop.f32.mrf.mxu1 }
 0x111   : > { %v3126_v33 = vpop.f32.mrf.mxu0  ;;  %v863_v22 = vadd.f32 %v862_v34, %v725_v30 }
 0x112   : > { %v3150_v37 = vpop.f32.mrf.mxu1 }
 0x113   : > { %v728_v35 = vpop.f32.mrf.mxu0  ;;  %v874_v26 = vadd.f32 %v3150_v37, %v3126_v33 }
 0x114   : > { %v865_v39 = vpop.f32.mrf.mxu1 }
 0x115   : > { %v3129_v36 = vpop.f32.mrf.mxu0  ;;  %v866_v32 = vadd.f32 %v865_v39, %v728_v35 }
 0x116   : > { %v3153_v40 = vpop.f32.mrf.mxu1 }
 0x117   : > { %v741_v38 = vpop.f32.mrf.mxu0  ;;  %v887_v20 = vadd.f32 %v3153_v40, %v3129_v36 }
 0x118   : > { %v878_v41 = vpop.f32.mrf.mxu1 }
 0x119   : > { %v3130_v31 = vpop.f32.mrf.mxu0  ;;  %v879_v24 = vadd.f32 %v878_v41, %v741_v38 }
 0x11a   : > { %v3154_v44 = vpop.f32.mrf.mxu1 }
 0x11b   : > { %v744_v42 = vpop.f32.mrf.mxu0 }
 0x11c   : > { %v881_v46 = vpop.f32.mrf.mxu1 }
 0x11d   : > { %v882_v30 = vadd.f32 %v881_v46, %v744_v42 }
 0x12d   : > { %v3173_v43 = vpop.f32.mrf.mxu0 }
 0x12e   : > { %v3197_v47 = vpop.f32.mrf.mxu1  ;;  %v1172_v23 = vadd.f32 %v3173_v43, %v871_v18 }
 0x12f   : > { %v1139_v45 = vpop.f32.mrf.mxu0 }
 0x130   : > { %v1312_v49 = vpop.f32.mrf.mxu1  ;;  %v1170_v27 = vadd.f32 %v1139_v45, %v863_v22 }
 0x131   : > { %v3174_v48 = vpop.f32.mrf.mxu0 }
 0x132   : > { %v3198_v51 = vpop.f32.mrf.mxu1  ;;  %v1173_v36 = vadd.f32 %v3174_v48, %v874_v26  ;;  %v1343_v43 = vadd.f32 %v1312_v49, %v1170_v27 }
 0x133   : > { %v1142_v50 = vpop.f32.mrf.mxu0 }
 0x134   : > { %v1315_v53 = vpop.f32.mrf.mxu1  ;;  %v1171_v38 = vadd.f32 %v1142_v50, %v866_v32  ;;  %v1346_v45 = vadd.f32 %v3198_v51, %v1173_v36 }
 0x135   : > { %v3177_v52 = vpop.f32.mrf.mxu0 }
 0x136   : > { %v3201_v55 = vpop.f32.mrf.mxu1  ;;  %v1176_v25 = vadd.f32 %v3177_v52, %v887_v20 }
 0x137   : > { %v1155_v54 = vpop.f32.mrf.mxu0 }
 0x138   : > { %v1328_v57 = vpop.f32.mrf.mxu1  ;;  %v1349_v34 = vadd.f32 %v3201_v55, %v1176_v25 }
 0x139   : > { %v3178_v56 = vpop.f32.mrf.mxu0 }
 0x13a   : > { %v3202_v59 = vpop.f32.mrf.mxu1 }
 0x13b   : > { %v1158_v58 = vpop.f32.mrf.mxu0 }
 0x13c   : > { %v1331_v61 = vpop.f32.mrf.mxu1  ;;  %v1175_v52 = vadd.f32 %v1158_v58, %v882_v30 }
 0x14d   : > { %v3221_v60 = vpop.f32.mrf.mxu0 }
 0x14e   : > { %v3245_v63 = vpop.f32.mrf.mxu1 }
 0x14f   : > { %v1485_v62 = vpop.f32.mrf.mxu0 }
 0x150   : > { %v1767_v1 = vpop.f32.mrf.mxu1  ;;  %v1516_v22 = vadd.f32 %v1485_v62, %v1343_v43 }
 0x151   : > { %v3222_v0 = vpop.f32.mrf.mxu0 }
 0x152   : > { %v3246_v3 = vpop.f32.mrf.mxu1  ;;  %v1519_v39 = vadd.f32 %v3222_v0, %v1346_v45  ;;  %v1798_v55 = vadd.f32 %v1767_v1, %v1516_v22 }
 0x153   : > { %v1488_v2 = vpop.f32.mrf.mxu0 }
 0x154   : > { %v4007_v5 = vpop.f32.mrf.mxu1  ;;  %v1801_v51 = vadd.f32 %v3246_v3, %v1519_v39 }
 0x155   : > { %v3225_v4 = vpop.f32.mrf.mxu0  ;;  %4050 = vst [vmem:[#allocation3_spill] sm:$0xff] %v4007_v5  ;;  %v890_v5 = vadd.f32 %v3154_v44, %v3130_v31 }
 0x156   : > { %v3249_v6 = vpop.f32.mrf.mxu1  ;;  %v1522_v33 = vadd.f32 %v3225_v4, %v1349_v34 }
 0x157   : > { %v1501_v7 = vpop.f32.mrf.mxu0  ;;  %v1177_v18 = vadd.f32 %v3178_v56, %v890_v5 }
 0x158   : > { %v1783_v8 = vpop.f32.mrf.mxu1  ;;  %v1804_v48 = vadd.f32 %v3249_v6, %v1522_v33 }
 0x159   : > { %v3226_v9 = vpop.f32.mrf.mxu0  ;;  %v1350_v31 = vadd.f32 %v3202_v59, %v1177_v18 }
 0x15a   : > { %v3250_v10 = vpop.f32.mrf.mxu1 }
 0x15b   : > { %v1504_v11 = vpop.f32.mrf.mxu0  ;;  %v1523_v42 = vadd.f32 %v3226_v9, %v1350_v31 }
 0x15c   : > { %v1786_v13 = vpop.f32.mrf.mxu1 }
 0x15d   : > { %v1805_v4 = vadd.f32 %v3250_v10, %v1523_v42 }
 0x16d   : > { %v3269_v12 = vpop.f32.mrf.mxu0 }
 0x16e   : > { %v3293_v14 = vpop.f32.mrf.mxu1 }
 0x16f   : > { %v1941_v15 = vpop.f32.mrf.mxu0 }
 0x170   : > { %v4009_v16 = vpop.f32.mrf.mxu1  ;;  %v1972_v62 = vadd.f32 %v1941_v15, %v1798_v55 }
 0x171   : > { %4051 = vst [vmem:[#allocation4_spill] sm:$0xff] %v4009_v16  ;;  %v3270_v17 = vpop.f32.mrf.mxu0  ;;  %v1174_v16 = vadd.f32 %v1155_v54, %v879_v24  ;;  %v1344_v54 = vadd.f32 %v1315_v53, %v1171_v38  ;;  %v4054_v53 = vld [vmem:[#allocation3_spill] sm:$0xff] }
 0x172   : > { %v4011_v19 = vpop.f32.mrf.mxu1 }
 0x173   : > { %4052 = vst [vmem:[#allocation5_spill] sm:$0xff] %v4011_v19  ;;  %v1944_v21 = vpop.f32.mrf.mxu0  ;;  %v1345_v19 = vadd.f32 %v3197_v47, %v1172_v23  ;;  %v1347_v20 = vadd.f32 %v1328_v57, %v1174_v16  ;;  %v1348_v47 = vadd.f32 %v1331_v61, %v1175_v52  ;;  %v1517_v49 = vadd.f32 %v1488_v2, %v1344_v54 }
 0x174   : > { %v4013_v28 = vpop.f32.mrf.mxu1  ;;  %v1975_v61 = vadd.f32 %v3270_v17, %v1801_v51 }
 0x175   : > { %4053 = vst [vmem:[#allocation6_spill] sm:$0xff] %v4013_v28  ;;  %v3273_v29 = vpop.f32.mrf.mxu0  ;;  %v1518_v41 = vadd.f32 %v3221_v60, %v1345_v19  ;;  %v1520_v44 = vadd.f32 %v1501_v7, %v1347_v20  ;;  %v1521_v58 = vadd.f32 %v1504_v11, %v1348_v47 }
 0x176   : > { %v3297_v40 = vpop.f32.mrf.mxu1  ;;  %v1978_v60 = vadd.f32 %v3273_v29, %v1804_v48 }
 0x177   : > { %v1957_v37 = vpop.f32.mrf.mxu0  ;;  %v1800_v35 = vadd.f32 %v3245_v63, %v1518_v41  ;;  %v1802_v57 = vadd.f32 %v1783_v8, %v1520_v44  ;;  %v1799_v63 = vadd.f32 %v4054_v53, %v1517_v49  ;;  %v1803_v7 = vadd.f32 %v1786_v13, %v1521_v58 }
 0x178   : > { %v2130_v28 = vpop.f32.mrf.mxu1  ;;  %v2151_v1 = vadd.f32 %v3297_v40, %v1978_v60  ;;  %v4055_v8 = vld [vmem:[#allocation4_spill] sm:$0xff] }
 0x179   : > { %v3274_v46 = vpop.f32.mrf.mxu0  ;;  %v1974_v50 = vadd.f32 %v3269_v12, %v1800_v35  ;;  %v1976_v59 = vadd.f32 %v1957_v37, %v1802_v57  ;;  %v2145_v11 = vadd.f32 %v4055_v8, %v1972_v62  ;;  %v1973_v12 = vadd.f32 %v1944_v21, %v1799_v63 }
 0x17a   : > { %v3298_v56 = vpop.f32.mrf.mxu1  ;;  %v1979_v2 = vadd.f32 %v3274_v46, %v1805_v4  ;;  %v4056_v23 = vld [vmem:[#allocation5_spill] sm:$0xff] }
 0x17b   : > { %v1960_v5 = vpop.f32.mrf.mxu0  ;;  %v2147_v0 = vadd.f32 %v3293_v14, %v1974_v50  ;;  %v2149_v10 = vadd.f32 %v2130_v28, %v1976_v59  ;;  %v2956_v14 = vld [vmem:[%s4046_s2] ss:$0 sm:$0xff]  ;;  %v2148_v13 = vadd.f32 %v4056_v23, %v1975_v61 }
 0x17c   : > { %v2133_v6 = vpop.f32.mrf.mxu1  ;;  %v1977_v16 = vadd.f32 %v1960_v5, %v1803_v7  ;;  %v2152_v26 = vadd.f32 %v3298_v56, %v1979_v2  ;;  %v4057_v21 = vld [vmem:[#allocation6_spill] sm:$0xff] }
 0x17d   : > { %v2146_v32 = vadd.f32 %v4057_v21, %v1973_v12 }
 0x17e   : > { %v2150_v30 = vadd.f32 %v2133_v6, %v1977_v16 }
 0x18d   : > { %v3317_v9 = vpop.f32.mrf.mxu0 }
 0x18e   : > { %v2429_v3 = vadd.f32 %v3317_v9, %v2147_v0  ;;  %v3321_v15 = vpop.f32.mrf.mxu1 }
 0x18f   : > { %v2433_v17 = vadd.f32 %v3321_v15, %v2151_v1  ;;  %v2396_v19 = vpop.f32.mrf.mxu0 }
 0x190   : > { %v2427_v24 = vadd.f32 %v2396_v19, %v2145_v11  ;;  %v2412_v25 = vpop.f32.mrf.mxu1  ;;  %v2444_v36 = vadd.f32 %v2956_v14, %v2429_v3 }
 0x191   : > { %v2431_v27 = vadd.f32 %v2412_v25, %v2149_v10  ;;  %v3318_v29 = vpop.f32.mrf.mxu0  ;;  %v2448_v34 = vadd.f32 %v2956_v14, %v2433_v17 }
 0x192   : > { %v2430_v28 = vadd.f32 %v3318_v29, %v2148_v13  ;;  %v3322_v40 = vpop.f32.mrf.mxu1  ;;  %v2442_v38 = vadd.f32 %v2956_v14, %v2427_v24  ;;  %v2452_v22 = vmax.f32 %v2444_v36, 0.0 }
 0x193   : > { %v2434_v18 = vadd.f32 %v3322_v40, %v2152_v26  ;;  %v2399_v43 = vpop.f32.mrf.mxu0  ;;  %v2446_v33 = vadd.f32 %v2956_v14, %v2431_v27  ;;  %v2456_v54 = vmax.f32 %v2448_v34, 0.0 }
 0x194   : > { %v2445_v41 = vadd.f32 %v2956_v14, %v2430_v28  ;;  %v2428_v20 = vadd.f32 %v2399_v43, %v2146_v32  ;;  %v2415_v52 = vpop.f32.mrf.mxu1  ;;  %v2450_v47 = vmax.f32 %v2442_v38, 0.0 }
 0x195   : > { %v2449_v37 = vadd.f32 %v2956_v14, %v2434_v18  ;;  %v2432_v45 = vadd.f32 %v2415_v52, %v2150_v30  ;;  %v2454_v46 = vmax.f32 %v2446_v33, 0.0 }
 0x196   : > { %v2453_v31 = vmax.f32 %v2445_v41, 0.0  ;;  %v2443_v44 = vadd.f32 %v2956_v14, %v2428_v20 }
 0x197   : > { %v2457_v35 = vmax.f32 %v2449_v37, 0.0  ;;  %v2447_v39 = vadd.f32 %v2956_v14, %v2432_v45 }
 0x198   : > { %v2984_v48 = vpack.c.bf16 %v2453_v31, %v2452_v22  ;;  %v2451_v42 = vmax.f32 %v2443_v44, 0.0 }
 0x199   : > { %v2994_v55 = vpack.c.bf16 %v2457_v35, %v2456_v54  ;;  %v2455_v49 = vmax.f32 %v2447_v39, 0.0 }
 0x19a   : > { %2996 = vst [vmem:[%s560_s11 + $0x8] sm:$0xff] %v2984_v48   ;;  %v2979_v50 = vpack.c.bf16 %v2451_v42, %v2450_v47 }
 0x19b   : > { %2998 = vst [vmem:[%s560_s11 + $0x18] sm:$0xff] %v2994_v55   ;;  %v2989_v56 = vpack.c.bf16 %v2455_v49, %v2454_v46 }
 0x19c   : > { %2980 = vst [vmem:[%s560_s11] sm:$0xff] %v2979_v50  }
 0x19d   : > { %2997 = vst [vmem:[%s560_s11 + $0x10] sm:$0xff] %v2989_v56  }
 0x19e PF: > { %s13_s16 = sadd.s32 1, %s3516_s16   ;;  %s4058_s12 = smov %s3504_s13 }
 0x19f   : > { %p10_p10 = scmp.ge.s32.totalorder %s13_s16, 4   ;;  %s4059_s13 = smov %s3573_s20 }
 0x1a0   : > { %s4060_s14 = smov %s3512_s15  ;;  %s4061_s15 = smov %s4063_s17 }
 0x1a1   :  { %12 = sbr.rel (!%p10_p10) target bundleno = 3 (0x3), region = 128 }

// kernel: bottleneck_forward.5
= control target key start
LH: loop header
LB: loop body
LE: loop exit
PB: predicated region body
PF: predicated region fallthrough
CT: control target
= control target key end

     0   :  { %s963_s21 = smov 0   ;;  %s1054_s0 = inlined_call_operand.vmem [shape: bf16[128,128], index: 0, kind: input, shape index: {}]   ;;  %s1055_s1 = inlined_call_operand.vmem [shape: bf16[128,128], index: 1, kind: input, shape index: {}]   ;;  %s1056_s2 = inlined_call_operand.vmem [shape: f32[1,128], index: 2, kind: input, shape index: {}]   ;;  %s1057_s3 = inlined_call_operand.vmem [shape: bf16[128,128], index: 3, kind: input, shape index: {}]   ;;  %s1058_s4 = inlined_call_operand.vmem [shape: bf16[128,128], index: 4, kind: input, shape index: {}]   ;;  %s1059_s5 = inlined_call_operand.vmem [shape: f32[1,128], index: 5, kind: input, shape index: {}]   ;;  %s1060_s6 = inlined_call_operand.vmem [shape: bf16[128,128], index: 6, kind: output, shape index: {}]  }
   0x1 LB: > { %s738_s22 = sadd.s32 4294967295, %s926_s21   ;;  %p742_p0 = scmp.ge.s32.totalorder %s926_s21, 1  ;;  %s926_s21 = sphi %s963_s21, %s16_s21  }
   0x2   : > { %p224_p1 = scmp.lt.s32.totalorder %s926_s21, 3 }
   0x4   : > { %p225_p2 = pnand %p742_p0, %p224_p1 }
   0x5   : > { %s743_s25 = sshll.u32 (!%p225_p2), %s738_s22, 3 }
   0x6   : > { %228 = sbr.rel (%p225_p2) target bundleno = 261 (0x105), region = 44  ;;  %p260_p3 = scmp.lt.s32.totalorder (!%p225_p2), %s743_s25, 15 }
   0xb   : > { %v896_v0 = vld [vmem:[%s1055_s1 + $0x38] sm:$0xff]   ;;  %v898_v2 = vld [vmem:[%s1055_s1 + $0x30] sm:$0xff]   ;;  %v900_v4 = vld [vmem:[%s1055_s1 + $0x28] sm:$0xff]   ;;  %s1062_s25 = smov (!%p260_p3, %s743_s25), 15 }
   0xc   : > { %v897_v1 = vld [vmem:[%s1058_s4 + $0x38] sm:$0xff]   ;;  %840 = vmatprep.subr.bf16.mxu0 %v896_v0  ;;  %v899_v3 = vld [vmem:[%s1058_s4 + $0x30] sm:$0xff]   ;;  %v901_v5 = vld [vmem:[%s1058_s4 + $0x28] sm:$0xff]   ;;  %s995_s16 = sshll.u32 %s1062_s25, 2 }
   0xd   : > { %864 = vmatprep.subr.bf16.mxu1 %v897_v1  ;;  %841 = vmatpush3.bf16.msra.mxu0 %v896_v0  ;;  %v902_v6 = vld [vmem:[%s1055_s1 + $0x20] sm:$0xff]   ;;  %v904_v8 = vld [vmem:[%s1055_s1 + $0x18] sm:$0xff]   ;;  %s1007_s24 = scalar_lea.vmem %s1054_s0, %s995_s16  ;;  %v906_v10 = vld [vmem:[%s1055_s1 + $0x10] sm:$0xff]   ;;  %s1016_s29 = scalar_lea.vmem %s1057_s3, %s995_s16 }
   0xe   : > { %865 = vmatpush3.bf16.msra.mxu1 %v897_v1  ;;  %842 = vmatprep.subr.bf16.mxu0 %v898_v2  ;;  %v903_v7 = vld [vmem:[%s1058_s4 + $0x20] sm:$0xff]   ;;  %v905_v9 = vld [vmem:[%s1058_s4 + $0x18] sm:$0xff]   ;;  %v907_v11 = vld [vmem:[%s1058_s4 + $0x10] sm:$0xff]  }
   0xf   : > { %866 = vmatprep.subr.bf16.mxu1 %v899_v3  ;;  %v912_v12 = vld [vmem:[%s1007_s24] sm:$0xff]   ;;  %v908_v14 = vld [vmem:[%s1055_s1 + $0x8] sm:$0xff]   ;;  %v916_v20 = vld [vmem:[%s1007_s24 + $0x10] sm:$0xff]  }
  0x10   : > { %v913_v13 = vld [vmem:[%s1016_s29] sm:$0xff]   ;;  %856 = vmatprep.mubr.bf16.mxu0 %v912_v12  ;;  %v909_v15 = vld [vmem:[%s1058_s4 + $0x8] sm:$0xff]   ;;  %v917_v21 = vld [vmem:[%s1016_s29 + $0x10] sm:$0xff]  }
  0x11   : > { %843 = vmatpush3.bf16.msra.mxu0 %v898_v2  ;;  %880 = vmatprep.mubr.bf16.mxu1 %v913_v13  ;;  %v910_v16 = vld [vmem:[%s1055_s1] sm:$0xff]   ;;  %v914_v18 = vld [vmem:[%s1007_s24 + $0x8] sm:$0xff]   ;;  %v918_v22 = vld [vmem:[%s1007_s24 + $0x18] sm:$0xff]   ;;  %s275_s24 = scalar_lea.vmem %s1060_s6, %s995_s16 }
  0x12   : > { %867 = vmatpush3.bf16.msra.mxu1 %v899_v3  ;;  %844 = vmatprep.subr.bf16.mxu0 %v900_v4  ;;  %v911_v17 = vld [vmem:[%s1058_s4] sm:$0xff]   ;;  %v915_v19 = vld [vmem:[%s1016_s29 + $0x8] sm:$0xff]   ;;  %v919_v23 = vld [vmem:[%s1016_s29 + $0x18] sm:$0xff]  }
  0x13   : > { %868 = vmatprep.subr.bf16.mxu1 %v901_v5  ;;  %v749_v24 = vld [vmem:[%s1056_s2] ss:$0 sm:$0xff] }
  0x14   : > { %v762_v25 = vld [vmem:[%s1059_s5] ss:$0 sm:$0xff] }
  0x15   : > { %845 = vmatpush3.bf16.msra.mxu0 %v900_v4 }
  0x16   : > { %869 = vmatpush3.bf16.msra.mxu1 %v901_v5  ;;  %846 = vmatprep.subr.bf16.mxu0 %v902_v6 }
  0x17   : > { %870 = vmatprep.subr.bf16.mxu1 %v903_v7 }
  0x19   : > { %847 = vmatpush3.bf16.msra.mxu0 %v902_v6 }
  0x1a   : > { %871 = vmatpush3.bf16.msra.mxu1 %v903_v7  ;;  %848 = vmatprep.subr.bf16.mxu0 %v904_v8 }
  0x1b   : > { %872 = vmatprep.subr.bf16.mxu1 %v905_v9 }
  0x1d   : > { %849 = vmatpush3.bf16.msra.mxu0 %v904_v8 }
  0x1e   : > { %873 = vmatpush3.bf16.msra.mxu1 %v905_v9  ;;  %850 = vmatprep.subr.bf16.mxu0 %v906_v10 }
  0x1f   : > { %874 = vmatprep.subr.bf16.mxu1 %v907_v11 }
  0x21   : > { %851 = vmatpush3.bf16.msra.mxu0 %v906_v10 }
  0x22   : > { %875 = vmatpush3.bf16.msra.mxu1 %v907_v11  ;;  %852 = vmatprep.subr.bf16.mxu0 %v908_v14 }
  0x23   : > { %876 = vmatprep.subr.bf16.mxu1 %v909_v15 }
  0x25   : > { %853 = vmatpush3.bf16.msra.mxu0 %v908_v14 }
  0x26   : > { %877 = vmatpush3.bf16.msra.mxu1 %v909_v15  ;;  %854 = vmatprep.subr.bf16.mxu0 %v910_v16 }
  0x27   : > { %878 = vmatprep.subr.bf16.mxu1 %v911_v17 }
  0x29   : > { %855 = vmatpush3.bf16.msra.mxu0 %v910_v16 }
  0x2a   : > { %879 = vmatpush3.bf16.msra.mxu1 %v911_v17 }
  0x2c   : > { %857 = vmatmul.mubr.bf16.vlgmr.msra.gmra.mxu0 %v914_v18 }
  0x2d   : > { %881 = vmatmul.mubr.bf16.vlgmr.msra.gmra.mxu1 %v915_v19  ;;  %860 = vmatprep.mubr.bf16.mxu0 %v916_v20 }
  0x2e   : > { %884 = vmatprep.mubr.bf16.mxu1 %v917_v21 }
  0x34   : > { %861 = vmatmul.mubr.bf16.gmra.mxu0 %v918_v22 }
  0x35   : > { %885 = vmatmul.mubr.bf16.gmra.mxu1 %v919_v23 }
  0xec   : > { %v858_v26 = vpop.f32.mrf.mxu0 }
  0xed   : > { %v424_v27 = vadd.f32 %v858_v26, %v749_v24  ;;  %v882_v28 = vpop.f32.mrf.mxu1 }
  0xee   : > { %v592_v29 = vadd.f32 %v882_v28, %v762_v25  ;;  %v415_v30 = vpop.f32.mrf.mxu0 }
  0xef   : > { %v416_v31 = vadd.f32 %v749_v24, %v415_v30  ;;  %v583_v32 = vpop.f32.mrf.mxu1 }
  0xf0   : > { %v584_v33 = vadd.f32 %v762_v25, %v583_v32  ;;  %v859_v34 = vpop.f32.mrf.mxu0  ;;  %v616_v35 = vadd.f32 %v592_v29, %v424_v27 }
  0xf1   : > { %v427_v36 = vadd.f32 %v859_v34, %v749_v24  ;;  %v883_v37 = vpop.f32.mrf.mxu1 }
  0xf2   : > { %v595_v38 = vadd.f32 %v883_v37, %v762_v25  ;;  %v418_v39 = vpop.f32.mrf.mxu0  ;;  %v614_v40 = vadd.f32 %v584_v33, %v416_v31  ;;  %v624_v46 = vmax.f32 %v616_v35, 0.0 }
  0xf3   : > { %v419_v41 = vadd.f32 %v749_v24, %v418_v39  ;;  %v586_v42 = vpop.f32.mrf.mxu1 }
  0xf4   : > { %v617_v43 = vadd.f32 %v595_v38, %v427_v36  ;;  %v587_v44 = vadd.f32 %v762_v25, %v586_v42  ;;  %v862_v45 = vpop.f32.mrf.mxu0  ;;  %v622_v53 = vmax.f32 %v614_v40, 0.0 }
  0xf5   : > { %v886_v47 = vpop.f32.mrf.mxu1  ;;  %v440_v50 = vadd.f32 %v862_v45, %v749_v24 }
  0xf6   : > { %v625_v48 = vmax.f32 %v617_v43, 0.0  ;;  %v615_v49 = vadd.f32 %v587_v44, %v419_v41  ;;  %v608_v51 = vadd.f32 %v886_v47, %v762_v25  ;;  %v431_v52 = vpop.f32.mrf.mxu0 }
  0xf7   : > { %v599_v54 = vpop.f32.mrf.mxu1  ;;  %v432_v57 = vadd.f32 %v749_v24, %v431_v52 }
  0xf8   : > { %v801_v55 = vpack.c.bf16 %v625_v48, %v624_v46  ;;  %v623_v56 = vmax.f32 %v615_v49, 0.0  ;;  %v600_v58 = vadd.f32 %v762_v25, %v599_v54  ;;  %v863_v59 = vpop.f32.mrf.mxu0  ;;  %v620_v63 = vadd.f32 %v608_v51, %v440_v50 }
  0xf9   : > { %v443_v60 = vadd.f32 %v863_v59, %v749_v24  ;;  %v887_v61 = vpop.f32.mrf.mxu1 }
  0xfa   : > { %813 = vst [vmem:[%s275_s24 + $0x8] sm:$0xff] %v801_v55   ;;  %v796_v62 = vpack.c.bf16 %v623_v56, %v622_v53  ;;  %v611_v0 = vadd.f32 %v887_v61, %v762_v25  ;;  %v434_v1 = vpop.f32.mrf.mxu0  ;;  %v618_v4 = vadd.f32 %v600_v58, %v432_v57  ;;  %v628_v7 = vmax.f32 %v620_v63, 0.0 }
  0xfb   : > { %v435_v2 = vadd.f32 %v749_v24, %v434_v1  ;;  %v602_v3 = vpop.f32.mrf.mxu1 }
  0xfc   : > { %797 = vst [vmem:[%s275_s24] sm:$0xff] %v796_v62   ;;  %v621_v5 = vadd.f32 %v611_v0, %v443_v60  ;;  %v603_v6 = vadd.f32 %v762_v25, %v602_v3  ;;  %v626_v10 = vmax.f32 %v618_v4, 0.0 }
  0xfe   : > { %v629_v8 = vmax.f32 %v621_v5, 0.0  ;;  %v619_v9 = vadd.f32 %v603_v6, %v435_v2 }
 0x100   : > { %v811_v11 = vpack.c.bf16 %v629_v8, %v628_v7  ;;  %v627_v12 = vmax.f32 %v619_v9, 0.0 }
 0x102   : > { %815 = vst [vmem:[%s275_s24 + $0x18] sm:$0xff] %v811_v11   ;;  %v806_v13 = vpack.c.bf16 %v627_v12, %v626_v10 }
 0x104   : > { %814 = vst [vmem:[%s275_s24 + $0x10] sm:$0xff] %v806_v13  }
 0x105 PF: > { %s16_s21 = sadd.s32 1, %s926_s21  }
 0x106   : > { %p13_p4 = scmp.ge.s32.totalorder %s16_s21, 4  }
 0x108   :  { %15 = sbr.rel (!%p13_p4) target bundleno = 1 (0x1), region = 77 }

</bundles_post_ra>
